<compile_context>
chip_gen: v6e
topology: v6e:2x2x1
jax: 0.10.0
libtpu: 0.0.40
codegen_flags: <defaults>
</compile_context>

<pallas_src>
import functools

import jax
import jax.numpy as jnp
import numpy as np
from jax import lax
from jax.experimental import pallas as pl
from jax.experimental.pallas import tpu as pltpu

NHEAD = 4

# Rows of the packed per-layer "small vector" table (fused biases + LN params).
_SA_BQKV = 0           # (3D)  fused self-attn qkv bias, Q part pre-scaled
_SA_BO = 1             # (D)
_CA_BQ = 2             # (D)   pre-scaled
_CA_BKV = 3            # (2D)  fused cross-attn k/v bias
_CA_BO = 4             # (D)
_B1 = 5                # (Dff)
_B2 = 6                # (D)
_G1, _BE1 = 7, 8
_G2, _BE2 = 9, 10
_G3, _BE3 = 11, 12
_NVEC = 13


def _round_up(x, m):
  return ((x + m - 1) // m) * m


# --------------------------------------------------------------------------
# Pallas kernel: one full decoder layer per (batch-tile, layer) grid step.
# --------------------------------------------------------------------------
def decoder_layer_kernel(tgt_ref, mem_ref,
                         sa_wqkv_ref, sa_wo_ref,
                         ca_wq_ref, ca_wkv_ref, ca_wo_ref,
                         w1_ref, w2_ref, vec_ref,
                         out_ref, *, d_model, nhead):
  layer = pl.program_id(1)                  # grid = (batch_tiles, num_layers)

  # Seed the resident running-state block with tgt on the first layer.
  @pl.when(layer == 0)
  def _():
    out_ref[...] = tgt_ref[...]

  B, St, Dp = out_ref.shape                 # Dp = lane-dense (128-padded) dim
  Sm = mem_ref.shape[1]
  D = d_model                               # real model dim (pad lanes are 0)
  hd = D // nhead                           # assumes nhead | d_model

  x = out_ref[...].reshape(B * St, Dp)      # (N, Dp) f32 running target
  mem = mem_ref[...].reshape(B * Sm, Dp)    # (M, Dp) f32

  sa_wqkv = sa_wqkv_ref[0]                  # (Dp, 3D)   bf16, fused q|k|v
  sa_wo = sa_wo_ref[0]                      # (D, Dp)    bf16
  ca_wq = ca_wq_ref[0]                      # (Dp, D)    bf16, pre-scaled
  ca_wkv = ca_wkv_ref[0]                    # (Dp, 2D)   bf16, fused k|v
  ca_wo = ca_wo_ref[0]                      # (D, Dp)    bf16
  w1 = w1_ref[0]                            # (Dp, Dffp) bf16
  w2 = w2_ref[0]                            # (Dffp, Dp) bf16
  vecs = vec_ref[0]                         # (_NVEC, P) f32
  Dffp = w1.shape[1]

  def vrow(i, n):
    return vecs[i:i + 1, :n]                # (1, n) f32

  def matmul(a_f32, w_bf16):
    # (N, K) f32 x (K, F) bf16 -> (N, F) f32  (bf16 MXU operands, f32 accum)
    return lax.dot_general(a_f32.astype(jnp.bfloat16), w_bf16,
                           (((1,), (0,)), ((), ())),
                           preferred_element_type=jnp.float32)

  def layer_norm(v, g, b):
    # Statistics over the REAL d_model only: padded lanes of v are exactly 0,
    # so sum(v)/D and sum(v*v)/D - mu^2 recover the unpadded mean / variance.
    inv_d = 1.0 / D
    mu = jnp.sum(v, axis=-1, keepdims=True) * inv_d
    var = jnp.sum(v * v, axis=-1, keepdims=True) * inv_d - mu * mu
    return (v - mu) * lax.rsqrt(var + 1e-5) * g + b

  def split_heads(t2d, S):
    # (B*S, D) -> (nhead*B, S, hd): heads folded into the leading batch dim so
    # the attention contractions are two batched einsums (no per-head matmuls).
    t3 = t2d.reshape(B, S, D)
    return jnp.concatenate(
        [t3[:, :, h * hd:(h + 1) * hd] for h in range(nhead)], axis=0
    ).astype(jnp.bfloat16)

  def attend(q2d, k2d, v2d, Sq, Sk, wo, bo):
    # The 1/sqrt(hd) softmax scale is folded into the Q weights/bias.
    qh, kh, vh = split_heads(q2d, Sq), split_heads(k2d, Sk), split_heads(v2d, Sk)
    s = jnp.einsum('bqd,bkd->bqk', qh, kh, preferred_element_type=jnp.float32)
    s = s - jnp.max(s, axis=-1, keepdims=True)
    p = jnp.exp(s)
    p = p * pl.reciprocal(jnp.sum(p, axis=-1, keepdims=True), approx=True)
    o = jnp.einsum('bqk,bkd->bqd', p.astype(jnp.bfloat16), vh,
                   preferred_element_type=jnp.float32)     # (nhead*B, Sq, hd)
    o = jnp.concatenate([o[h * B:(h + 1) * B] for h in range(nhead)], axis=-1)
    return matmul(o.reshape(B * Sq, D), wo) + bo           # (N, Dp)

  # 1) self-attention: single fused (N,Dp)x(Dp,3D) QKV matmul, then add & LN
  qkv = matmul(x, sa_wqkv) + vrow(_SA_BQKV, 3 * D)
  sa = attend(qkv[:, :D], qkv[:, D:2 * D], qkv[:, 2 * D:], St, St,
              sa_wo, vrow(_SA_BO, Dp))
  x = layer_norm(x + sa, vrow(_G1, Dp), vrow(_BE1, Dp))

  # 2) cross-attention: Q from tgt, fused (M,Dp)x(Dp,2D) K/V from memory
  q = matmul(x, ca_wq) + vrow(_CA_BQ, D)
  kv = matmul(mem, ca_wkv) + vrow(_CA_BKV, 2 * D)
  ca = attend(q, kv[:, :D], kv[:, D:], St, Sm, ca_wo, vrow(_CA_BO, Dp))
  x = layer_norm(x + ca, vrow(_G2, Dp), vrow(_BE2, Dp))

  # 3) feed-forward (ReLU) + add & LN
  h1 = jnp.maximum(matmul(x, w1) + vrow(_B1, Dffp), 0.0)
  x = layer_norm(x + matmul(h1, w2) + vrow(_B2, Dp),
                 vrow(_G3, Dp), vrow(_BE3, Dp))

  out_ref[...] = x.reshape(B, St, Dp).astype(out_ref.dtype)


# --------------------------------------------------------------------------
# One-time weight packing (hoisted out of the per-call jitted path).
# --------------------------------------------------------------------------
def prepare_decoder_params(params, nhead=NHEAD):
  """Transpose / fuse / cast / pad all per-layer weights once."""
  L, _, D = params['sa_wqkv'].shape
  Dff = params['w1'].shape[1]
  hd = D // nhead
  scale = 1.0 / float(np.sqrt(hd))
  Dp = _round_up(D, 128)            # lane-dense model dim
  Dffp = _round_up(Dff, 128)        # lane-dense FFN dim
  P = _round_up(max(3 * D, Dp, Dffp), 128)

  def pad_last(w, n):
    return jnp.pad(w, ((0, 0), (0, 0), (0, n - w.shape[2])))

  def pad_mid(w, n):
    return jnp.pad(w, ((0, 0), (0, n - w.shape[1]), (0, 0)))

  # Self-attn fused QKV weight: (L, Dp, 3D), Q columns pre-scaled by 1/sqrt(hd)
  sa_wt = jnp.swapaxes(params['sa_wqkv'], 1, 2)                     # (L, D, 3D)
  sa_wt = jnp.concatenate([sa_wt[:, :, :D] * scale, sa_wt[:, :, D:]], axis=2)
  sa_wqkv = pad_mid(sa_wt, Dp).astype(jnp.bfloat16)

  # Cross-attn: Q (L, Dp, D) pre-scaled, fused KV (L, Dp, 2D)
  ca_wt = jnp.swapaxes(params['ca_wqkv'], 1, 2)                     # (L, D, 3D)
  ca_wq = pad_mid(ca_wt[:, :, :D] * scale, Dp).astype(jnp.bfloat16)
  ca_wkv = pad_mid(ca_wt[:, :, D:], Dp).astype(jnp.bfloat16)

  # Output projections: (L, D, Dp)
  sa_wo = pad_last(jnp.swapaxes(params['sa_wo'], 1, 2), Dp).astype(jnp.bfloat16)
  ca_wo = pad_last(jnp.swapaxes(params['ca_wo'], 1, 2), Dp).astype(jnp.bfloat16)

  # FFN: w1 (L, Dp, Dffp), w2 (L, Dffp, Dp)
  w1 = pad_last(pad_mid(jnp.swapaxes(params['w1'], 1, 2), Dp),
                Dffp).astype(jnp.bfloat16)
  w2 = pad_last(pad_mid(jnp.swapaxes(params['w2'], 1, 2), Dffp),
                Dp).astype(jnp.bfloat16)

  # Pack all small per-layer vectors into one (L, _NVEC, P) table, zero-padded
  # (pad lanes of gamma/beta/bias MUST be zero so padded activations stay 0).
  def row(v):
    v = v.astype(jnp.float32)
    return jnp.pad(v, ((0, 0), (0, P - v.shape[1])))[:, None, :]

  sa_b = params['sa_bqkv'][:, 0, :]
  sa_b = jnp.concatenate([sa_b[:, :D] * scale, sa_b[:, D:]], axis=1)
  ca_b = params['ca_bqkv'][:, 0, :]
  vecs = jnp.concatenate([
      row(sa_b),                         # _SA_BQKV
      row(params['sa_bo'][:, 0]),        # _SA_BO
      row(ca_b[:, :D] * scale),          # _CA_BQ
      row(ca_b[:, D:]),                  # _CA_BKV
      row(params['ca_bo'][:, 0]),        # _CA_BO
      row(params['b1'][:, 0]),           # _B1
      row(params['b2'][:, 0]),           # _B2
      row(params['g1'][:, 0]), row(params['be1'][:, 0]),
      row(params['g2'][:, 0]), row(params['be2'][:, 0]),
      row(params['g3'][:, 0]), row(params['be3'][:, 0]),
  ], axis=1)                                                       # (L,_NVEC,P)

  return dict(sa_wqkv=sa_wqkv, sa_wo=sa_wo, ca_wq=ca_wq, ca_wkv=ca_wkv,
              ca_wo=ca_wo, w1=w1, w2=w2, vecs=vecs)


def _vmem_limit_bytes(Bb, St, Sm, D, Dp, Dffp, nvec, P):
  # Double-buffered bf16 per-layer weights + f32 activation blocks + margin
  # for in-kernel temporaries (scores, qkv, FFN hidden).
  wbytes = 2 * (Dp * 3 * D + D * Dp + Dp * D + Dp * 2 * D + D * Dp
                + Dp * Dffp + Dffp * Dp) + 4 * nvec * P
  act = 4 * Bb * (St * Dp + Sm * Dp + St * Dp)
  est = 2 * wbytes + 2 * act + (16 << 20)
  return int(min(max(est, 32 << 20), 100 << 20))


def default_batch_tiles(batch):
  """2 batch tiles (one per TensorCore) on 2-TC chips (v7x); 1 on v5e/v6e."""
  try:
    kind = jax.devices()[0].device_kind.lower()
    multi_core = ('v7' in kind) or ('7x' in kind)
  except Exception:
    multi_core = False
  return 2 if (multi_core and batch % 2 == 0) else 1


# --------------------------------------------------------------------------
# Wrapper: lane-dense activation padding + pallas_call.
# --------------------------------------------------------------------------
@functools.partial(jax.jit, static_argnames=('nhead', 'batch_tiles'))
def transformer_decoder(tgt, memory, packed, *, nhead=NHEAD, batch_tiles=1):
  """Runs the decoder stack. `packed` comes from prepare_decoder_params()."""
  B, St, D = tgt.shape
  _, Sm, _ = memory.shape
  L, Dp, _ = packed['ca_wq'].shape
  Dffp = packed['w1'].shape[2]
  nvec, P = packed['vecs'].shape[1], packed['vecs'].shape[2]

  bt = batch_tiles if (batch_tiles >= 1 and B % batch_tiles == 0) else 1
  Bb = B // bt

  # Lane-dense activations: zero-pad d_model up to Dp (multiple of 128).
  pad = Dp - D
  tgt_p = jnp.pad(tgt.astype(jnp.float32), ((0, 0), (0, 0), (0, pad)))
  mem_p = jnp.pad(memory.astype(jnp.float32), ((0, 0), (0, 0), (0, pad)))

  kernel = functools.partial(decoder_layer_kernel, d_model=D, nhead=nhead)

  def act_spec(S):
    # TODO(synk): pipeline_mode=pl.Buffered(1) would halve the footprint of
    # these constant-index blocks once single-buffering is plumbed here.
    return pl.BlockSpec((Bb, S, Dp), lambda b, l: (b, 0, 0))

  def w_spec(shape):
    return pl.BlockSpec((1,) + shape, lambda b, l: (l,) + (0,) * len(shape))

  in_specs = [
      act_spec(St),                # tgt (aliased to the output buffer)
      act_spec(Sm),                # memory
      w_spec((Dp, 3 * D)),         # fused self-attn qkv weights (Q pre-scaled)
      w_spec((D, Dp)),             # self-attn out proj
      w_spec((Dp, D)),             # cross-attn q weights (pre-scaled)
      w_spec((Dp, 2 * D)),         # fused cross-attn k/v weights
      w_spec((D, Dp)),             # cross-attn out proj
      w_spec((Dp, Dffp)),          # FFN w1
      w_spec((Dffp, Dp)),          # FFN w2
      w_spec((nvec, P)),           # packed fused biases + LayerNorm params
  ]

  out_p = pl.pallas_call(
      kernel,
      out_shape=jax.ShapeDtypeStruct((B, St, Dp), jnp.float32),
      grid_spec=pltpu.PrefetchScalarGridSpec(
          num_scalar_prefetch=0,
          grid=(bt, L),            # layer axis innermost -> resident output
          in_specs=in_specs,
          out_specs=act_spec(St),
      ),
      input_output_aliases={0: 0},
      compiler_params=pltpu.CompilerParams(
          dimension_semantics=("parallel", "arbitrary"),
          vmem_limit_bytes=_vmem_limit_bytes(Bb, St, Sm, D, Dp, Dffp, nvec, P),
      ),
  )(tgt_p, mem_p, packed['sa_wqkv'], packed['sa_wo'], packed['ca_wq'],
    packed['ca_wkv'], packed['ca_wo'], packed['w1'], packed['w2'],
    packed['vecs'])

  return out_p[:, :, :D]


# --------------------------------------------------------------------------
# Pure-JAX f32 reference (mirrors nn.TransformerDecoderLayer eval semantics).
# --------------------------------------------------------------------------
def _mha_ref(q_in, kv_in, wqkv, bqkv, wo, bo, nhead):
  D = q_in.shape[-1]
  hd = D // nhead
  q = q_in @ wqkv[:D].T + bqkv[0, :D]
  k = kv_in @ wqkv[D:2 * D].T + bqkv[0, D:2 * D]
  v = kv_in @ wqkv[2 * D:].T + bqkv[0, 2 * D:]
  B, Sq, _ = q.shape
  Sk = k.shape[1]
  q = q.reshape(B, Sq, nhead, hd).transpose(0, 2, 1, 3)
  k = k.reshape(B, Sk, nhead, hd).transpose(0, 2, 1, 3)
  v = v.reshape(B, Sk, nhead, hd).transpose(0, 2, 1, 3)
  s = jnp.einsum('bhqd,bhkd->bhqk', q, k) / np.sqrt(hd)
  p = jax.nn.softmax(s, axis=-1)
  o = jnp.einsum('bhqk,bhkd->bhqd', p, v).transpose(0, 2, 1, 3).reshape(B, Sq, D)
  return o @ wo.T + bo[0]


def _ln_ref(x, g, b):
  mu = x.mean(-1, keepdims=True)
  var = ((x - mu) ** 2).mean(-1, keepdims=True)
  return (x - mu) * jax.lax.rsqrt(var + 1e-5) * g[0] + b[0]


def transformer_decoder_ref(tgt, memory, params, num_layers):
  x = tgt
  p = params
  for l in range(num_layers):
    x = _ln_ref(x + _mha_ref(x, x, p['sa_wqkv'][l], p['sa_bqkv'][l],
                             p['sa_wo'][l], p['sa_bo'][l], NHEAD),
                p['g1'][l], p['be1'][l])
    x = _ln_ref(x + _mha_ref(x, memory, p['ca_wqkv'][l], p['ca_bqkv'][l],
                             p['ca_wo'][l], p['ca_bo'][l], NHEAD),
                p['g2'][l], p['be2'][l])
    h = jnp.maximum(x @ p['w1'][l].T + p['b1'][l][0], 0.0)
    ff = h @ p['w2'][l].T + p['b2'][l][0]
    x = _ln_ref(x + ff, p['g3'][l], p['be3'][l])
  return x


# --------------------------------------------------------------------------
def init_params(key, L, D, Dff):
  ks = jax.random.split(key, 20)
  w = lambda k, shape, s=0.05: (s * jax.random.normal(k, shape)).astype(jnp.float32)
  return {
      'sa_wqkv': w(ks[0], (L, 3 * D, D)),
      'sa_bqkv': w(ks[1], (L, 1, 3 * D), 0.02),
      'sa_wo':   w(ks[2], (L, D, D)),
      'sa_bo':   w(ks[3], (L, 1, D), 0.02),
      'ca_wqkv': w(ks[4], (L, 3 * D, D)),
      'ca_bqkv': w(ks[5], (L, 1, 3 * D), 0.02),
      'ca_wo':   w(ks[6], (L, D, D)),
      'ca_bo':   w(ks[7], (L, 1, D), 0.02),
      'w1':      w(ks[8], (L, Dff, D)),
      'b1':      w(ks[9], (L, 1, Dff), 0.02),
      'w2':      w(ks[10], (L, D, Dff)),
      'b2':      w(ks[11], (L, 1, D), 0.02),
      'g1': jnp.ones((L, 1, D), jnp.float32) + w(ks[12], (L, 1, D), 0.01),
      'be1': w(ks[13], (L, 1, D), 0.02),
      'g2': jnp.ones((L, 1, D), jnp.float32) + w(ks[14], (L, 1, D), 0.01),
      'be2': w(ks[15], (L, 1, D), 0.02),
      'g3': jnp.ones((L, 1, D), jnp.float32) + w(ks[16], (L, 1, D), 0.01),
      'be3': w(ks[17], (L, 1, D), 0.02),
  }


if __name__ == "__main__":
  B, St, Sm, D, Dff, L = 2, 8, 8, 32, 64, 3

  key = jax.random.PRNGKey(0)
  k_tgt, k_mem, k_par = jax.random.split(key, 3)
  tgt = jax.random.normal(k_tgt, (B, St, D), jnp.float32)
  memory = jax.random.normal(k_mem, (B, Sm, D), jnp.float32)
  params = init_params(k_par, L, D, Dff)

  # One-time weight packing (hoisted out of the per-call path).
  packed = prepare_decoder_params(params)
  bt = default_batch_tiles(B)

  out = transformer_decoder(tgt, memory, packed, nhead=NHEAD, batch_tiles=bt)
  out = jax.block_until_ready(out)

  ref = transformer_decoder_ref(tgt, memory, params, L)
  # Kernel uses bf16 MXU inputs (f32 accumulation) and approx reciprocal in the
  # softmax; tolerance chosen accordingly vs. the f32 reference.
  np.testing.assert_allclose(np.asarray(out), np.asarray(ref),
                             rtol=5e-2, atol=5e-2)

  print("KERNEL_OK")
</pallas_src>

<mosaic_0001>
module attributes {stable_mosaic.version = 11 : i64} {
  func.func @decoder_layer_kernel(%arg0: i32, %arg1: i32, %arg2: memref<2x8x128xf32, #tpu.memory_space<vmem>>, %arg3: memref<2x8x128xf32, #tpu.memory_space<vmem>>, %arg4: memref<1x128x96xbf16, #tpu.memory_space<vmem>>, %arg5: memref<1x32x128xbf16, #tpu.memory_space<vmem>>, %arg6: memref<1x128x32xbf16, #tpu.memory_space<vmem>>, %arg7: memref<1x128x64xbf16, #tpu.memory_space<vmem>>, %arg8: memref<1x32x128xbf16, #tpu.memory_space<vmem>>, %arg9: memref<1x128x128xbf16, #tpu.memory_space<vmem>>, %arg10: memref<1x128x128xbf16, #tpu.memory_space<vmem>>, %arg11: memref<1x13x128xf32, #tpu.memory_space<vmem>>, %arg12: memref<2x8x128xf32, #tpu.memory_space<vmem>>) attributes {dimension_semantics = [#tpu.dimension_semantics<parallel>, #tpu.dimension_semantics<arbitrary>], iteration_bounds = array<i64: 1, 3>, scalar_prefetch = 0 : i64, scratch_operands = 0 : i64, tpu.core_type = #tpu.core_type<tc>, window_params = [{transform_indices = @transform_0, window_bounds = array<i64: 2, 8, 128>}, {transform_indices = @transform_1, window_bounds = array<i64: 2, 8, 128>}, {transform_indices = @transform_2, window_bounds = array<i64: 1, 128, 96>}, {transform_indices = @transform_3, window_bounds = array<i64: 1, 32, 128>}, {transform_indices = @transform_4, window_bounds = array<i64: 1, 128, 32>}, {transform_indices = @transform_5, window_bounds = array<i64: 1, 128, 64>}, {transform_indices = @transform_6, window_bounds = array<i64: 1, 32, 128>}, {transform_indices = @transform_7, window_bounds = array<i64: 1, 128, 128>}, {transform_indices = @transform_8, window_bounds = array<i64: 1, 128, 128>}, {transform_indices = @transform_9, window_bounds = array<i64: 1, 13, 128>}, {transform_indices = @transform_10, window_bounds = array<i64: 2, 8, 128>}]} {
    %c0_i32 = arith.constant 0 : i32
    %0 = arith.cmpi eq, %arg1, %c0_i32 : i32
    %1 = arith.extui %0 : i1 to i32
    %c0_i32_0 = arith.constant 0 : i32
    %2 = arith.cmpi ne, %1, %c0_i32_0 : i32
    scf.if %2 {
      %c0_63 = arith.constant 0 : index
      %c0_64 = arith.constant 0 : index
      %c0_65 = arith.constant 0 : index
      %222 = vector.load %arg2[%c0_63, %c0_64, %c0_65] : memref<2x8x128xf32, #tpu.memory_space<vmem>>, vector<2x8x128xf32>
      %c0_66 = arith.constant 0 : index
      %c0_67 = arith.constant 0 : index
      %c0_68 = arith.constant 0 : index
      %223 = vector.load %arg12[%c0_66, %c0_67, %c0_68] : memref<2x8x128xf32, #tpu.memory_space<vmem>>, vector<2x8x128xf32>
      tpu.vector_store %arg12[%c0_66, %c0_67, %c0_68], %222 {strides = array<i32>} : memref<2x8x128xf32, #tpu.memory_space<vmem>>, vector<2x8x128xf32>,
    } else {
    }
    %c0 = arith.constant 0 : index
    %c0_1 = arith.constant 0 : index
    %c0_2 = arith.constant 0 : index
    %3 = vector.load %arg12[%c0, %c0_1, %c0_2] : memref<2x8x128xf32, #tpu.memory_space<vmem>>, vector<2x8x128xf32>
    %4 = vector.shape_cast %3 : vector<2x8x128xf32> to vector<16x128xf32>
    %c0_3 = arith.constant 0 : index
    %c0_4 = arith.constant 0 : index
    %c0_5 = arith.constant 0 : index
    %5 = vector.load %arg3[%c0_3, %c0_4, %c0_5] : memref<2x8x128xf32, #tpu.memory_space<vmem>>, vector<2x8x128xf32>
    %6 = vector.shape_cast %5 : vector<2x8x128xf32> to vector<16x128xf32>
    %c0_6 = arith.constant 0 : index
    %c0_7 = arith.constant 0 : index
    %c0_8 = arith.constant 0 : index
    %7 = vector.load %arg4[%c0_6, %c0_7, %c0_8] : memref<1x128x96xbf16, #tpu.memory_space<vmem>>, vector<1x128x96xbf16>
    %8 = vector.shape_cast %7 : vector<1x128x96xbf16> to vector<128x96xbf16>
    %c0_9 = arith.constant 0 : index
    %c0_10 = arith.constant 0 : index
    %c0_11 = arith.constant 0 : index
    %9 = vector.load %arg5[%c0_9, %c0_10, %c0_11] : memref<1x32x128xbf16, #tpu.memory_space<vmem>>, vector<1x32x128xbf16>
    %10 = vector.shape_cast %9 : vector<1x32x128xbf16> to vector<32x128xbf16>
    %c0_12 = arith.constant 0 : index
    %c0_13 = arith.constant 0 : index
    %c0_14 = arith.constant 0 : index
    %11 = vector.load %arg6[%c0_12, %c0_13, %c0_14] : memref<1x128x32xbf16, #tpu.memory_space<vmem>>, vector<1x128x32xbf16>
    %12 = vector.shape_cast %11 : vector<1x128x32xbf16> to vector<128x32xbf16>
    %c0_15 = arith.constant 0 : index
    %c0_16 = arith.constant 0 : index
    %c0_17 = arith.constant 0 : index
    %13 = vector.load %arg7[%c0_15, %c0_16, %c0_17] : memref<1x128x64xbf16, #tpu.memory_space<vmem>>, vector<1x128x64xbf16>
    %14 = vector.shape_cast %13 : vector<1x128x64xbf16> to vector<128x64xbf16>
    %c0_18 = arith.constant 0 : index
    %c0_19 = arith.constant 0 : index
    %c0_20 = arith.constant 0 : index
    %15 = vector.load %arg8[%c0_18, %c0_19, %c0_20] : memref<1x32x128xbf16, #tpu.memory_space<vmem>>, vector<1x32x128xbf16>
    %16 = vector.shape_cast %15 : vector<1x32x128xbf16> to vector<32x128xbf16>
    %c0_21 = arith.constant 0 : index
    %c0_22 = arith.constant 0 : index
    %c0_23 = arith.constant 0 : index
    %17 = vector.load %arg9[%c0_21, %c0_22, %c0_23] : memref<1x128x128xbf16, #tpu.memory_space<vmem>>, vector<1x128x128xbf16>
    %18 = vector.shape_cast %17 : vector<1x128x128xbf16> to vector<128x128xbf16>
    %c0_24 = arith.constant 0 : index
    %c0_25 = arith.constant 0 : index
    %c0_26 = arith.constant 0 : index
    %19 = vector.load %arg10[%c0_24, %c0_25, %c0_26] : memref<1x128x128xbf16, #tpu.memory_space<vmem>>, vector<1x128x128xbf16>
    %20 = vector.shape_cast %19 : vector<1x128x128xbf16> to vector<128x128xbf16>
    %c0_27 = arith.constant 0 : index
    %c0_28 = arith.constant 0 : index
    %c0_29 = arith.constant 0 : index
    %21 = vector.load %arg11[%c0_27, %c0_28, %c0_29] : memref<1x13x128xf32, #tpu.memory_space<vmem>>, vector<1x13x128xf32>
    %22 = vector.shape_cast %21 : vector<1x13x128xf32> to vector<13x128xf32>
    %23 = arith.truncf %4 : vector<16x128xf32> to vector<16x128xbf16>
    %cst = arith.constant dense<0.000000e+00> : vector<16x96xf32>
    %24 = tpu.matmul %23, %8, %cst {dimension_numbers = #tpu.dot_dimension_numbers<[1], [0], [0], [1], [0, 0, 1, 1], [], []>} : vector<16x128xbf16>, vector<128x96xbf16>, vector<16x96xf32> -> vector<16x96xf32>
    %25 = vector.extract_strided_slice %22 {offsets = [0, 0], sizes = [1, 96], strides = [1, 1]} : vector<13x128xf32> to vector<1x96xf32>
    %26 = vector.broadcast %25 : vector<1x96xf32> to vector<16x96xf32>
    %27 = arith.addf %24, %26 : vector<16x96xf32>
    %28 = vector.extract_strided_slice %27 {offsets = [0, 0], sizes = [16, 32], strides = [1, 1]} : vector<16x96xf32> to vector<16x32xf32>
    %29 = vector.extract_strided_slice %27 {offsets = [0, 32], sizes = [16, 32], strides = [1, 1]} : vector<16x96xf32> to vector<16x32xf32>
    %30 = vector.extract_strided_slice %27 {offsets = [0, 64], sizes = [16, 32], strides = [1, 1]} : vector<16x96xf32> to vector<16x32xf32>
    %31 = vector.extract_strided_slice %22 {offsets = [1, 0], sizes = [1, 128], strides = [1, 1]} : vector<13x128xf32> to vector<1x128xf32>
    %32 = vector.shape_cast %28 : vector<16x32xf32> to vector<2x8x32xf32>
    %33 = vector.extract_strided_slice %32 {offsets = [0, 0, 0], sizes = [2, 8, 8], strides = [1, 1, 1]} : vector<2x8x32xf32> to vector<2x8x8xf32>
    %34 = vector.extract_strided_slice %32 {offsets = [0, 0, 8], sizes = [2, 8, 8], strides = [1, 1, 1]} : vector<2x8x32xf32> to vector<2x8x8xf32>
    %35 = vector.extract_strided_slice %32 {offsets = [0, 0, 16], sizes = [2, 8, 8], strides = [1, 1, 1]} : vector<2x8x32xf32> to vector<2x8x8xf32>
    %36 = vector.extract_strided_slice %32 {offsets = [0, 0, 24], sizes = [2, 8, 8], strides = [1, 1, 1]} : vector<2x8x32xf32> to vector<2x8x8xf32>
    %37 = tpu.concatenate %33, %34, %35, %36 in 0 : vector<2x8x8xf32>, vector<2x8x8xf32>, vector<2x8x8xf32>, vector<2x8x8xf32> -> vector<8x8x8xf32>
    %38 = arith.truncf %37 : vector<8x8x8xf32> to vector<8x8x8xbf16>
    %39 = vector.shape_cast %29 : vector<16x32xf32> to vector<2x8x32xf32>
    %40 = vector.extract_strided_slice %39 {offsets = [0, 0, 0], sizes = [2, 8, 8], strides = [1, 1, 1]} : vector<2x8x32xf32> to vector<2x8x8xf32>
    %41 = vector.extract_strided_slice %39 {offsets = [0, 0, 8], sizes = [2, 8, 8], strides = [1, 1, 1]} : vector<2x8x32xf32> to vector<2x8x8xf32>
    %42 = vector.extract_strided_slice %39 {offsets = [0, 0, 16], sizes = [2, 8, 8], strides = [1, 1, 1]} : vector<2x8x32xf32> to vector<2x8x8xf32>
    %43 = vector.extract_strided_slice %39 {offsets = [0, 0, 24], sizes = [2, 8, 8], strides = [1, 1, 1]} : vector<2x8x32xf32> to vector<2x8x8xf32>
    %44 = tpu.concatenate %40, %41, %42, %43 in 0 : vector<2x8x8xf32>, vector<2x8x8xf32>, vector<2x8x8xf32>, vector<2x8x8xf32> -> vector<8x8x8xf32>
    %45 = arith.truncf %44 : vector<8x8x8xf32> to vector<8x8x8xbf16>
    %46 = vector.shape_cast %30 : vector<16x32xf32> to vector<2x8x32xf32>
    %47 = vector.extract_strided_slice %46 {offsets = [0, 0, 0], sizes = [2, 8, 8], strides = [1, 1, 1]} : vector<2x8x32xf32> to vector<2x8x8xf32>
    %48 = vector.extract_strided_slice %46 {offsets = [0, 0, 8], sizes = [2, 8, 8], strides = [1, 1, 1]} : vector<2x8x32xf32> to vector<2x8x8xf32>
    %49 = vector.extract_strided_slice %46 {offsets = [0, 0, 16], sizes = [2, 8, 8], strides = [1, 1, 1]} : vector<2x8x32xf32> to vector<2x8x8xf32>
    %50 = vector.extract_strided_slice %46 {offsets = [0, 0, 24], sizes = [2, 8, 8], strides = [1, 1, 1]} : vector<2x8x32xf32> to vector<2x8x8xf32>
    %51 = tpu.concatenate %47, %48, %49, %50 in 0 : vector<2x8x8xf32>, vector<2x8x8xf32>, vector<2x8x8xf32>, vector<2x8x8xf32> -> vector<8x8x8xf32>
    %52 = arith.truncf %51 : vector<8x8x8xf32> to vector<8x8x8xbf16>
    "tpu.trace_start"() <{level = 10 : i32, message = "bqd,bkd->bqk"}> : () -> ()
    %cst_30 = arith.constant dense<0.000000e+00> : vector<8x8x8xf32>
    %53 = tpu.matmul %38, %45, %cst_30 {dimension_numbers = #tpu.dot_dimension_numbers<[2], [2], [1], [1], [0, 0, 0, 1, 1, 1], [0], [0]>} : vector<8x8x8xbf16>, vector<8x8x8xbf16>, vector<8x8x8xf32> -> vector<8x8x8xf32>
    "tpu.trace_stop"() : () -> ()
    %cst_31 = arith.constant dense<0xFF800000> : vector<8x8xf32>
    %54 = vector.multi_reduction <maximumf>, %53, %cst_31 [2] : vector<8x8x8xf32> to vector<8x8xf32>
    %55 = vector.shape_cast %54 : vector<8x8xf32> to vector<8x8x1xf32>
    %56 = vector.broadcast %55 : vector<8x8x1xf32> to vector<8x8x8xf32>
    %57 = arith.subf %53, %56 : vector<8x8x8xf32>
    %58 = math.exp %57 : vector<8x8x8xf32>
    %cst_32 = arith.constant dense<0.000000e+00> : vector<8x8xf32>
    %59 = vector.multi_reduction <add>, %58, %cst_32 [2] : vector<8x8x8xf32> to vector<8x8xf32>
    %60 = vector.shape_cast %59 : vector<8x8xf32> to vector<8x8x1xf32>
    %61 = tpu.reciprocal %60 {approx = true} : vector<8x8x1xf32> -> vector<8x8x1xf32>
    %62 = vector.broadcast %61 : vector<8x8x1xf32> to vector<8x8x8xf32>
    %63 = arith.mulf %58, %62 : vector<8x8x8xf32>
    %64 = arith.truncf %63 : vector<8x8x8xf32> to vector<8x8x8xbf16>
    "tpu.trace_start"() <{level = 10 : i32, message = "bqk,bkd->bqd"}> : () -> ()
    %cst_33 = arith.constant dense<0.000000e+00> : vector<8x8x8xf32>
    %65 = tpu.matmul %64, %52, %cst_33 {dimension_numbers = #tpu.dot_dimension_numbers<[2], [1], [1], [2], [0, 0, 0, 1, 1, 2], [0], [0]>} : vector<8x8x8xbf16>, vector<8x8x8xbf16>, vector<8x8x8xf32> -> vector<8x8x8xf32>
    "tpu.trace_stop"() : () -> ()
    %66 = vector.extract_strided_slice %65 {offsets = [0, 0, 0], sizes = [2, 8, 8], strides = [1, 1, 1]} : vector<8x8x8xf32> to vector<2x8x8xf32>
    %67 = vector.extract_strided_slice %65 {offsets = [2, 0, 0], sizes = [2, 8, 8], strides = [1, 1, 1]} : vector<8x8x8xf32> to vector<2x8x8xf32>
    %68 = vector.extract_strided_slice %65 {offsets = [4, 0, 0], sizes = [2, 8, 8], strides = [1, 1, 1]} : vector<8x8x8xf32> to vector<2x8x8xf32>
    %69 = vector.extract_strided_slice %65 {offsets = [6, 0, 0], sizes = [2, 8, 8], strides = [1, 1, 1]} : vector<8x8x8xf32> to vector<2x8x8xf32>
    %70 = tpu.concatenate %66, %67, %68, %69 in 2 : vector<2x8x8xf32>, vector<2x8x8xf32>, vector<2x8x8xf32>, vector<2x8x8xf32> -> vector<2x8x32xf32>
    %71 = vector.shape_cast %70 : vector<2x8x32xf32> to vector<16x32xf32>
    %72 = arith.truncf %71 : vector<16x32xf32> to vector<16x32xbf16>
    %cst_34 = arith.constant dense<0.000000e+00> : vector<16x128xf32>
    %73 = tpu.matmul %72, %10, %cst_34 {dimension_numbers = #tpu.dot_dimension_numbers<[1], [0], [0], [1], [0, 0, 1, 1], [], []>} : vector<16x32xbf16>, vector<32x128xbf16>, vector<16x128xf32> -> vector<16x128xf32>
    %74 = vector.broadcast %31 : vector<1x128xf32> to vector<16x128xf32>
    %75 = arith.addf %73, %74 : vector<16x128xf32>
    %76 = arith.addf %4, %75 : vector<16x128xf32>
    %77 = vector.extract_strided_slice %22 {offsets = [7, 0], sizes = [1, 128], strides = [1, 1]} : vector<13x128xf32> to vector<1x128xf32>
    %78 = vector.extract_strided_slice %22 {offsets = [8, 0], sizes = [1, 128], strides = [1, 1]} : vector<13x128xf32> to vector<1x128xf32>
    %cst_35 = arith.constant dense<0.000000e+00> : vector<16xf32>
    %79 = vector.multi_reduction <add>, %76, %cst_35 [1] : vector<16x128xf32> to vector<16xf32>
    %80 = vector.shape_cast %79 : vector<16xf32> to vector<16x1xf32>
    %cst_36 = arith.constant 3.125000e-02 : f32
    %81 = vector.broadcast %cst_36 : f32 to vector<16x1xf32>
    %82 = arith.mulf %80, %81 : vector<16x1xf32>
    %83 = arith.mulf %76, %76 : vector<16x128xf32>
    %cst_37 = arith.constant dense<0.000000e+00> : vector<16xf32>
    %84 = vector.multi_reduction <add>, %83, %cst_37 [1] : vector<16x128xf32> to vector<16xf32>
    %85 = vector.shape_cast %84 : vector<16xf32> to vector<16x1xf32>
    %cst_38 = arith.constant 3.125000e-02 : f32
    %86 = vector.broadcast %cst_38 : f32 to vector<16x1xf32>
    %87 = arith.mulf %85, %86 : vector<16x1xf32>
    %88 = arith.mulf %82, %82 : vector<16x1xf32>
    %89 = arith.subf %87, %88 : vector<16x1xf32>
    %90 = vector.broadcast %82 : vector<16x1xf32> to vector<16x128xf32>
    %91 = arith.subf %76, %90 : vector<16x128xf32>
    %cst_39 = arith.constant 9.99999974E-6 : f32
    %92 = vector.broadcast %cst_39 : f32 to vector<16x1xf32>
    %93 = arith.addf %89, %92 : vector<16x1xf32>
    %94 = math.rsqrt %93 : vector<16x1xf32>
    %95 = vector.broadcast %94 : vector<16x1xf32> to vector<16x128xf32>
    %96 = arith.mulf %91, %95 : vector<16x128xf32>
    %97 = vector.broadcast %77 : vector<1x128xf32> to vector<16x128xf32>
    %98 = arith.mulf %96, %97 : vector<16x128xf32>
    %99 = vector.broadcast %78 : vector<1x128xf32> to vector<16x128xf32>
    %100 = arith.addf %98, %99 : vector<16x128xf32>
    %101 = arith.truncf %100 : vector<16x128xf32> to vector<16x128xbf16>
    %cst_40 = arith.constant dense<0.000000e+00> : vector<16x32xf32>
    %102 = tpu.matmul %101, %12, %cst_40 {dimension_numbers = #tpu.dot_dimension_numbers<[1], [0], [0], [1], [0, 0, 1, 1], [], []>} : vector<16x128xbf16>, vector<128x32xbf16>, vector<16x32xf32> -> vector<16x32xf32>
    %103 = vector.extract_strided_slice %22 {offsets = [2, 0], sizes = [1, 32], strides = [1, 1]} : vector<13x128xf32> to vector<1x32xf32>
    %104 = vector.broadcast %103 : vector<1x32xf32> to vector<16x32xf32>
    %105 = arith.addf %102, %104 : vector<16x32xf32>
    %106 = arith.truncf %6 : vector<16x128xf32> to vector<16x128xbf16>
    %cst_41 = arith.constant dense<0.000000e+00> : vector<16x64xf32>
    %107 = tpu.matmul %106, %14, %cst_41 {dimension_numbers = #tpu.dot_dimension_numbers<[1], [0], [0], [1], [0, 0, 1, 1], [], []>} : vector<16x128xbf16>, vector<128x64xbf16>, vector<16x64xf32> -> vector<16x64xf32>
    %108 = vector.extract_strided_slice %22 {offsets = [3, 0], sizes = [1, 64], strides = [1, 1]} : vector<13x128xf32> to vector<1x64xf32>
    %109 = vector.broadcast %108 : vector<1x64xf32> to vector<16x64xf32>
    %110 = arith.addf %107, %109 : vector<16x64xf32>
    %111 = vector.extract_strided_slice %110 {offsets = [0, 0], sizes = [16, 32], strides = [1, 1]} : vector<16x64xf32> to vector<16x32xf32>
    %112 = vector.extract_strided_slice %110 {offsets = [0, 32], sizes = [16, 32], strides = [1, 1]} : vector<16x64xf32> to vector<16x32xf32>
    %113 = vector.extract_strided_slice %22 {offsets = [4, 0], sizes = [1, 128], strides = [1, 1]} : vector<13x128xf32> to vector<1x128xf32>
    %114 = vector.shape_cast %105 : vector<16x32xf32> to vector<2x8x32xf32>
    %115 = vector.extract_strided_slice %114 {offsets = [0, 0, 0], sizes = [2, 8, 8], strides = [1, 1, 1]} : vector<2x8x32xf32> to vector<2x8x8xf32>
    %116 = vector.extract_strided_slice %114 {offsets = [0, 0, 8], sizes = [2, 8, 8], strides = [1, 1, 1]} : vector<2x8x32xf32> to vector<2x8x8xf32>
    %117 = vector.extract_strided_slice %114 {offsets = [0, 0, 16], sizes = [2, 8, 8], strides = [1, 1, 1]} : vector<2x8x32xf32> to vector<2x8x8xf32>
    %118 = vector.extract_strided_slice %114 {offsets = [0, 0, 24], sizes = [2, 8, 8], strides = [1, 1, 1]} : vector<2x8x32xf32> to vector<2x8x8xf32>
    %119 = tpu.concatenate %115, %116, %117, %118 in 0 : vector<2x8x8xf32>, vector<2x8x8xf32>, vector<2x8x8xf32>, vector<2x8x8xf32> -> vector<8x8x8xf32>
    %120 = arith.truncf %119 : vector<8x8x8xf32> to vector<8x8x8xbf16>
    %121 = vector.shape_cast %111 : vector<16x32xf32> to vector<2x8x32xf32>
    %122 = vector.extract_strided_slice %121 {offsets = [0, 0, 0], sizes = [2, 8, 8], strides = [1, 1, 1]} : vector<2x8x32xf32> to vector<2x8x8xf32>
    %123 = vector.extract_strided_slice %121 {offsets = [0, 0, 8], sizes = [2, 8, 8], strides = [1, 1, 1]} : vector<2x8x32xf32> to vector<2x8x8xf32>
    %124 = vector.extract_strided_slice %121 {offsets = [0, 0, 16], sizes = [2, 8, 8], strides = [1, 1, 1]} : vector<2x8x32xf32> to vector<2x8x8xf32>
    %125 = vector.extract_strided_slice %121 {offsets = [0, 0, 24], sizes = [2, 8, 8], strides = [1, 1, 1]} : vector<2x8x32xf32> to vector<2x8x8xf32>
    %126 = tpu.concatenate %122, %123, %124, %125 in 0 : vector<2x8x8xf32>, vector<2x8x8xf32>, vector<2x8x8xf32>, vector<2x8x8xf32> -> vector<8x8x8xf32>
    %127 = arith.truncf %126 : vector<8x8x8xf32> to vector<8x8x8xbf16>
    %128 = vector.shape_cast %112 : vector<16x32xf32> to vector<2x8x32xf32>
    %129 = vector.extract_strided_slice %128 {offsets = [0, 0, 0], sizes = [2, 8, 8], strides = [1, 1, 1]} : vector<2x8x32xf32> to vector<2x8x8xf32>
    %130 = vector.extract_strided_slice %128 {offsets = [0, 0, 8], sizes = [2, 8, 8], strides = [1, 1, 1]} : vector<2x8x32xf32> to vector<2x8x8xf32>
    %131 = vector.extract_strided_slice %128 {offsets = [0, 0, 16], sizes = [2, 8, 8], strides = [1, 1, 1]} : vector<2x8x32xf32> to vector<2x8x8xf32>
    %132 = vector.extract_strided_slice %128 {offsets = [0, 0, 24], sizes = [2, 8, 8], strides = [1, 1, 1]} : vector<2x8x32xf32> to vector<2x8x8xf32>
    %133 = tpu.concatenate %129, %130, %131, %132 in 0 : vector<2x8x8xf32>, vector<2x8x8xf32>, vector<2x8x8xf32>, vector<2x8x8xf32> -> vector<8x8x8xf32>
    %134 = arith.truncf %133 : vector<8x8x8xf32> to vector<8x8x8xbf16>
    "tpu.trace_start"() <{level = 10 : i32, message = "bqd,bkd->bqk"}> : () -> ()
    %cst_42 = arith.constant dense<0.000000e+00> : vector<8x8x8xf32>
    %135 = tpu.matmul %120, %127, %cst_42 {dimension_numbers = #tpu.dot_dimension_numbers<[2], [2], [1], [1], [0, 0, 0, 1, 1, 1], [0], [0]>} : vector<8x8x8xbf16>, vector<8x8x8xbf16>, vector<8x8x8xf32> -> vector<8x8x8xf32>
    "tpu.trace_stop"() : () -> ()
    %cst_43 = arith.constant dense<0xFF800000> : vector<8x8xf32>
    %136 = vector.multi_reduction <maximumf>, %135, %cst_43 [2] : vector<8x8x8xf32> to vector<8x8xf32>
    %137 = vector.shape_cast %136 : vector<8x8xf32> to vector<8x8x1xf32>
    %138 = vector.broadcast %137 : vector<8x8x1xf32> to vector<8x8x8xf32>
    %139 = arith.subf %135, %138 : vector<8x8x8xf32>
    %140 = math.exp %139 : vector<8x8x8xf32>
    %cst_44 = arith.constant dense<0.000000e+00> : vector<8x8xf32>
    %141 = vector.multi_reduction <add>, %140, %cst_44 [2] : vector<8x8x8xf32> to vector<8x8xf32>
    %142 = vector.shape_cast %141 : vector<8x8xf32> to vector<8x8x1xf32>
    %143 = tpu.reciprocal %142 {approx = true} : vector<8x8x1xf32> -> vector<8x8x1xf32>
    %144 = vector.broadcast %143 : vector<8x8x1xf32> to vector<8x8x8xf32>
    %145 = arith.mulf %140, %144 : vector<8x8x8xf32>
    %146 = arith.truncf %145 : vector<8x8x8xf32> to vector<8x8x8xbf16>
    "tpu.trace_start"() <{level = 10 : i32, message = "bqk,bkd->bqd"}> : () -> ()
    %cst_45 = arith.constant dense<0.000000e+00> : vector<8x8x8xf32>
    %147 = tpu.matmul %146, %134, %cst_45 {dimension_numbers = #tpu.dot_dimension_numbers<[2], [1], [1], [2], [0, 0, 0, 1, 1, 2], [0], [0]>} : vector<8x8x8xbf16>, vector<8x8x8xbf16>, vector<8x8x8xf32> -> vector<8x8x8xf32>
    "tpu.trace_stop"() : () -> ()
    %148 = vector.extract_strided_slice %147 {offsets = [0, 0, 0], sizes = [2, 8, 8], strides = [1, 1, 1]} : vector<8x8x8xf32> to vector<2x8x8xf32>
    %149 = vector.extract_strided_slice %147 {offsets = [2, 0, 0], sizes = [2, 8, 8], strides = [1, 1, 1]} : vector<8x8x8xf32> to vector<2x8x8xf32>
    %150 = vector.extract_strided_slice %147 {offsets = [4, 0, 0], sizes = [2, 8, 8], strides = [1, 1, 1]} : vector<8x8x8xf32> to vector<2x8x8xf32>
    %151 = vector.extract_strided_slice %147 {offsets = [6, 0, 0], sizes = [2, 8, 8], strides = [1, 1, 1]} : vector<8x8x8xf32> to vector<2x8x8xf32>
    %152 = tpu.concatenate %148, %149, %150, %151 in 2 : vector<2x8x8xf32>, vector<2x8x8xf32>, vector<2x8x8xf32>, vector<2x8x8xf32> -> vector<2x8x32xf32>
    %153 = vector.shape_cast %152 : vector<2x8x32xf32> to vector<16x32xf32>
    %154 = arith.truncf %153 : vector<16x32xf32> to vector<16x32xbf16>
    %cst_46 = arith.constant dense<0.000000e+00> : vector<16x128xf32>
    %155 = tpu.matmul %154, %16, %cst_46 {dimension_numbers = #tpu.dot_dimension_numbers<[1], [0], [0], [1], [0, 0, 1, 1], [], []>} : vector<16x32xbf16>, vector<32x128xbf16>, vector<16x128xf32> -> vector<16x128xf32>
    %156 = vector.broadcast %113 : vector<1x128xf32> to vector<16x128xf32>
    %157 = arith.addf %155, %156 : vector<16x128xf32>
    %158 = arith.addf %100, %157 : vector<16x128xf32>
    %159 = vector.extract_strided_slice %22 {offsets = [9, 0], sizes = [1, 128], strides = [1, 1]} : vector<13x128xf32> to vector<1x128xf32>
    %160 = vector.extract_strided_slice %22 {offsets = [10, 0], sizes = [1, 128], strides = [1, 1]} : vector<13x128xf32> to vector<1x128xf32>
    %cst_47 = arith.constant dense<0.000000e+00> : vector<16xf32>
    %161 = vector.multi_reduction <add>, %158, %cst_47 [1] : vector<16x128xf32> to vector<16xf32>
    %162 = vector.shape_cast %161 : vector<16xf32> to vector<16x1xf32>
    %cst_48 = arith.constant 3.125000e-02 : f32
    %163 = vector.broadcast %cst_48 : f32 to vector<16x1xf32>
    %164 = arith.mulf %162, %163 : vector<16x1xf32>
    %165 = arith.mulf %158, %158 : vector<16x128xf32>
    %cst_49 = arith.constant dense<0.000000e+00> : vector<16xf32>
    %166 = vector.multi_reduction <add>, %165, %cst_49 [1] : vector<16x128xf32> to vector<16xf32>
    %167 = vector.shape_cast %166 : vector<16xf32> to vector<16x1xf32>
    %cst_50 = arith.constant 3.125000e-02 : f32
    %168 = vector.broadcast %cst_50 : f32 to vector<16x1xf32>
    %169 = arith.mulf %167, %168 : vector<16x1xf32>
    %170 = arith.mulf %164, %164 : vector<16x1xf32>
    %171 = arith.subf %169, %170 : vector<16x1xf32>
    %172 = vector.broadcast %164 : vector<16x1xf32> to vector<16x128xf32>
    %173 = arith.subf %158, %172 : vector<16x128xf32>
    %cst_51 = arith.constant 9.99999974E-6 : f32
    %174 = vector.broadcast %cst_51 : f32 to vector<16x1xf32>
    %175 = arith.addf %171, %174 : vector<16x1xf32>
    %176 = math.rsqrt %175 : vector<16x1xf32>
    %177 = vector.broadcast %176 : vector<16x1xf32> to vector<16x128xf32>
    %178 = arith.mulf %173, %177 : vector<16x128xf32>
    %179 = vector.broadcast %159 : vector<1x128xf32> to vector<16x128xf32>
    %180 = arith.mulf %178, %179 : vector<16x128xf32>
    %181 = vector.broadcast %160 : vector<1x128xf32> to vector<16x128xf32>
    %182 = arith.addf %180, %181 : vector<16x128xf32>
    %183 = arith.truncf %182 : vector<16x128xf32> to vector<16x128xbf16>
    %cst_52 = arith.constant dense<0.000000e+00> : vector<16x128xf32>
    %184 = tpu.matmul %183, %18, %cst_52 {dimension_numbers = #tpu.dot_dimension_numbers<[1], [0], [0], [1], [0, 0, 1, 1], [], []>} : vector<16x128xbf16>, vector<128x128xbf16>, vector<16x128xf32> -> vector<16x128xf32>
    %185 = vector.extract_strided_slice %22 {offsets = [5, 0], sizes = [1, 128], strides = [1, 1]} : vector<13x128xf32> to vector<1x128xf32>
    %186 = vector.broadcast %185 : vector<1x128xf32> to vector<16x128xf32>
    %187 = arith.addf %184, %186 : vector<16x128xf32>
    %cst_53 = arith.constant 0.000000e+00 : f32
    %188 = vector.broadcast %cst_53 : f32 to vector<16x128xf32>
    %189 = arith.maximumf %187, %188 : vector<16x128xf32>
    %190 = arith.truncf %189 : vector<16x128xf32> to vector<16x128xbf16>
    %cst_54 = arith.constant dense<0.000000e+00> : vector<16x128xf32>
    %191 = tpu.matmul %190, %20, %cst_54 {dimension_numbers = #tpu.dot_dimension_numbers<[1], [0], [0], [1], [0, 0, 1, 1], [], []>} : vector<16x128xbf16>, vector<128x128xbf16>, vector<16x128xf32> -> vector<16x128xf32>
    %192 = arith.addf %182, %191 : vector<16x128xf32>
    %193 = vector.extract_strided_slice %22 {offsets = [6, 0], sizes = [1, 128], strides = [1, 1]} : vector<13x128xf32> to vector<1x128xf32>
    %194 = vector.broadcast %193 : vector<1x128xf32> to vector<16x128xf32>
    %195 = arith.addf %192, %194 : vector<16x128xf32>
    %196 = vector.extract_strided_slice %22 {offsets = [11, 0], sizes = [1, 128], strides = [1, 1]} : vector<13x128xf32> to vector<1x128xf32>
    %197 = vector.extract_strided_slice %22 {offsets = [12, 0], sizes = [1, 128], strides = [1, 1]} : vector<13x128xf32> to vector<1x128xf32>
    %cst_55 = arith.constant dense<0.000000e+00> : vector<16xf32>
    %198 = vector.multi_reduction <add>, %195, %cst_55 [1] : vector<16x128xf32> to vector<16xf32>
    %199 = vector.shape_cast %198 : vector<16xf32> to vector<16x1xf32>
    %cst_56 = arith.constant 3.125000e-02 : f32
    %200 = vector.broadcast %cst_56 : f32 to vector<16x1xf32>
    %201 = arith.mulf %199, %200 : vector<16x1xf32>
    %202 = arith.mulf %195, %195 : vector<16x128xf32>
    %cst_57 = arith.constant dense<0.000000e+00> : vector<16xf32>
    %203 = vector.multi_reduction <add>, %202, %cst_57 [1] : vector<16x128xf32> to vector<16xf32>
    %204 = vector.shape_cast %203 : vector<16xf32> to vector<16x1xf32>
    %cst_58 = arith.constant 3.125000e-02 : f32
    %205 = vector.broadcast %cst_58 : f32 to vector<16x1xf32>
    %206 = arith.mulf %204, %205 : vector<16x1xf32>
    %207 = arith.mulf %201, %201 : vector<16x1xf32>
    %208 = arith.subf %206, %207 : vector<16x1xf32>
    %209 = vector.broadcast %201 : vector<16x1xf32> to vector<16x128xf32>
    %210 = arith.subf %195, %209 : vector<16x128xf32>
    %cst_59 = arith.constant 9.99999974E-6 : f32
    %211 = vector.broadcast %cst_59 : f32 to vector<16x1xf32>
    %212 = arith.addf %208, %211 : vector<16x1xf32>
    %213 = math.rsqrt %212 : vector<16x1xf32>
    %214 = vector.broadcast %213 : vector<16x1xf32> to vector<16x128xf32>
    %215 = arith.mulf %210, %214 : vector<16x128xf32>
    %216 = vector.broadcast %196 : vector<1x128xf32> to vector<16x128xf32>
    %217 = arith.mulf %215, %216 : vector<16x128xf32>
    %218 = vector.broadcast %197 : vector<1x128xf32> to vector<16x128xf32>
    %219 = arith.addf %217, %218 : vector<16x128xf32>
    %220 = vector.shape_cast %219 : vector<16x128xf32> to vector<2x8x128xf32>
    %c0_60 = arith.constant 0 : index
    %c0_61 = arith.constant 0 : index
    %c0_62 = arith.constant 0 : index
    %221 = vector.load %arg12[%c0_60, %c0_61, %c0_62] : memref<2x8x128xf32, #tpu.memory_space<vmem>>, vector<2x8x128xf32>
    tpu.vector_store %arg12[%c0_60, %c0_61, %c0_62], %220 {strides = array<i32>} : memref<2x8x128xf32, #tpu.memory_space<vmem>>, vector<2x8x128xf32>,
    return
  }
  func.func @transform_0(%arg0: i32, %arg1: i32) -> (i32, i32, i32) {
    %c0_i32 = arith.constant 0 : i32
    %c0_i32_0 = arith.constant 0 : i32
    %c0_i32_1 = arith.constant 0 : i32
    return %arg0, %c0_i32, %c0_i32_0 : i32, i32, i32
  }
  func.func @transform_1(%arg0: i32, %arg1: i32) -> (i32, i32, i32) {
    %c0_i32 = arith.constant 0 : i32
    %c0_i32_0 = arith.constant 0 : i32
    %c0_i32_1 = arith.constant 0 : i32
    return %arg0, %c0_i32, %c0_i32_0 : i32, i32, i32
  }
  func.func @transform_2(%arg0: i32, %arg1: i32) -> (i32, i32, i32) {
    %c0_i32 = arith.constant 0 : i32
    %c0_i32_0 = arith.constant 0 : i32
    %c0_i32_1 = arith.constant 0 : i32
    return %arg1, %c0_i32, %c0_i32_0 : i32, i32, i32
  }
  func.func @transform_3(%arg0: i32, %arg1: i32) -> (i32, i32, i32) {
    %c0_i32 = arith.constant 0 : i32
    %c0_i32_0 = arith.constant 0 : i32
    %c0_i32_1 = arith.constant 0 : i32
    return %arg1, %c0_i32, %c0_i32_0 : i32, i32, i32
  }
  func.func @transform_4(%arg0: i32, %arg1: i32) -> (i32, i32, i32) {
    %c0_i32 = arith.constant 0 : i32
    %c0_i32_0 = arith.constant 0 : i32
    %c0_i32_1 = arith.constant 0 : i32
    return %arg1, %c0_i32, %c0_i32_0 : i32, i32, i32
  }
  func.func @transform_5(%arg0: i32, %arg1: i32) -> (i32, i32, i32) {
    %c0_i32 = arith.constant 0 : i32
    %c0_i32_0 = arith.constant 0 : i32
    %c0_i32_1 = arith.constant 0 : i32
    return %arg1, %c0_i32, %c0_i32_0 : i32, i32, i32
  }
  func.func @transform_6(%arg0: i32, %arg1: i32) -> (i32, i32, i32) {
    %c0_i32 = arith.constant 0 : i32
    %c0_i32_0 = arith.constant 0 : i32
    %c0_i32_1 = arith.constant 0 : i32
    return %arg1, %c0_i32, %c0_i32_0 : i32, i32, i32
  }
  func.func @transform_7(%arg0: i32, %arg1: i32) -> (i32, i32, i32) {
    %c0_i32 = arith.constant 0 : i32
    %c0_i32_0 = arith.constant 0 : i32
    %c0_i32_1 = arith.constant 0 : i32
    return %arg1, %c0_i32, %c0_i32_0 : i32, i32, i32
  }
  func.func @transform_8(%arg0: i32, %arg1: i32) -> (i32, i32, i32) {
    %c0_i32 = arith.constant 0 : i32
    %c0_i32_0 = arith.constant 0 : i32
    %c0_i32_1 = arith.constant 0 : i32
    return %arg1, %c0_i32, %c0_i32_0 : i32, i32, i32
  }
  func.func @transform_9(%arg0: i32, %arg1: i32) -> (i32, i32, i32) {
    %c0_i32 = arith.constant 0 : i32
    %c0_i32_0 = arith.constant 0 : i32
    %c0_i32_1 = arith.constant 0 : i32
    return %arg1, %c0_i32, %c0_i32_0 : i32, i32, i32
  }
  func.func @transform_10(%arg0: i32, %arg1: i32) -> (i32, i32, i32) {
    %c0_i32 = arith.constant 0 : i32
    %c0_i32_0 = arith.constant 0 : i32
    %c0_i32_1 = arith.constant 0 : i32
    return %arg0, %c0_i32, %c0_i32_0 : i32, i32, i32
  }
}

</mosaic_0001>

<bundles_post_ra>
// kernel: transformer_decoder.1
= control target key start
LH: loop header
LB: loop body
LE: loop exit
PB: predicated region body
PF: predicated region fallthrough
CT: control target
= control target key end

     0   :  { %s4282_s13 = smov 0   ;;  %s4284_s14 = smov 0   ;;  %s4945_s0 = inlined_call_operand.vmem [shape: f32[2,8,128], index: 0, kind: input, shape index: {}, may-alias: {0,10}]   ;;  %s4946_s1 = inlined_call_operand.vmem [shape: f32[2,8,128], index: 1, kind: input, shape index: {}]   ;;  %s4947_s2 = inlined_call_operand.vmem [shape: bf16[3,128,96], index: 2, kind: input, shape index: {}]   ;;  %s4948_s3 = inlined_call_operand.vmem [shape: bf16[3,32,128], index: 3, kind: input, shape index: {}]   ;;  %s4949_s4 = inlined_call_operand.vmem [shape: bf16[3,128,32], index: 4, kind: input, shape index: {}]   ;;  %s4950_s5 = inlined_call_operand.vmem [shape: bf16[3,128,64], index: 5, kind: input, shape index: {}]   ;;  %s4951_s6 = inlined_call_operand.vmem [shape: bf16[3,32,128], index: 6, kind: input, shape index: {}]   ;;  %s4952_s7 = inlined_call_operand.vmem [shape: bf16[3,128,128], index: 7, kind: input, shape index: {}]   ;;  %s4953_s8 = inlined_call_operand.vmem [shape: bf16[3,128,128], index: 8, kind: input, shape index: {}]   ;;  %s4954_s9 = inlined_call_operand.vmem [shape: f32[3,13,128], index: 9, kind: input, shape index: {}]   ;;  %s4955_s10 = inlined_call_operand.vmem [shape: f32[2,8,128], index: 10, kind: output, shape index: {}, may-alias: {0,10}]  }
   0x1   :  { %4956 = sst [smem:[#allocation2_spill]] %s4947_s2  ;;  %s4286_s15 = smov 0  }
   0x2   :  { %4957 = sst [smem:[#allocation3_spill]] %s4948_s3 }
   0x3   :  { %4958 = sst [smem:[#allocation4_spill]] %s4949_s4 }
   0x4   :  { %4959 = sst [smem:[#allocation5_spill]] %s4950_s5 }
   0x5 LB: > { %s29_s16 = sadd.s32 1, %s4211_s14  ;;  %p3436_p0 = scmp.ge.s32.totalorder %s4215_s15, 1  ;;  %s4215_s15 = sphi %s4286_s15, %s20_s15   ;;  %s4211_s14 = sphi %s4284_s14, %s4965_s14   ;;  %s4207_s13 = sphi %s4282_s13, %s4964_s13  }
   0x6   : > { %p30_p1 = scmp.ge.s32.totalorder %s29_s16, 3  ;;  %p416_p2 = scmp.lt.s32.totalorder %s4215_s15, 4 }
   0x8   : > { %s4967_s16 = smov (%p30_p1, %s29_s16), 0  ;;  %p417_p3 = pnand %p3436_p0, %p416_p2 }
   0x9   : > { %p511_p4 = scmp.lt.s32.totalorder (!%p417_p3), %s4207_s13, 2  ;;  %s4960_s2 = sld [smem:[#allocation2_spill]] (!%p417_p3) }
   0xa   : > { %420 = sbr.rel (%p417_p3) target bundleno = 3906 (0xf42), region = 60  ;;  %s4961_s3 = sld [smem:[#allocation3_spill]] (!%p417_p3) }
   0xb   : > { %s4962_s4 = sld [smem:[#allocation4_spill]] (!%p417_p3)  ;;  %p3453_p5 = scmp.ne.s32.totalorder (!%p417_p3), %s4207_s13, 0 }
   0xc   : > { %s4963_s5 = sld [smem:[#allocation5_spill]] (!%p417_p3) }
   0xf   : > { %s512_s17 = scalar_select %p511_p4, %s4207_s13, 2 }
  0x11   : > { %s3536_s18 = sshll.u32 %s512_s17, 6  ;;  %s3537_s19 = sshll.u32 %s512_s17, 4 }
  0x12   : > { %s4303_s22 = scalar_lea.vmem %s4960_s2, %s3536_s18  ;;  %s4308_s25 = scalar_lea.vmem %s4961_s3, %s3537_s19 }
  0x13   : > { %s4313_s28 = scalar_lea.vmem %s4962_s4, %s3536_s18  ;;  %s4318_s11 = scalar_lea.vmem %s4963_s5, %s3536_s18 }
  0x14   : > { %s4323_s20 = scalar_lea.vmem %s4951_s6, %s3537_s19  ;;  %s4328_s23 = scalar_lea.vmem %s4952_s7, %s3536_s18 }
  0x15   : > { %s4333_s26 = scalar_lea.vmem %s4953_s8, %s3536_s18  ;;  %s4338_s29 = scalar_lea.vmem %s4954_s9, %s3537_s19 }
  0x16   : > { %561 = sbr.rel (%p3453_p5) target bundleno = 29 (0x1d), region = 64 }
  0x1b   : > { %v562_v0 = vld [vmem:[%s4945_s0] sm:$0xff]  ;;  %v563_v1 = vld [vmem:[%s4945_s0 + $0x8] sm:$0xff] }
  0x1c   : > { %564 = vst [vmem:[%s4955_s10] sm:$0xff] %v562_v0  ;;  %565 = vst [vmem:[%s4955_s10 + $0x8] sm:$0xff] %v563_v1 }
  0x1d PF: > { %v4071_v2 = vld [vmem:[%s4303_s22 + $0x38] sm:$0xff]   ;;  %v4217_v3 = vmov 0.0   ;;  %v4072_v4 = vld [vmem:[%s4303_s22 + $0x30] sm:$0xff]   ;;  %vm4218_vm0 = vmmov 0   ;;  %v4073_v5 = vld [vmem:[%s4303_s22 + $0x28] sm:$0xff]   ;;  %v661_v14 = vlaneseq  ;;  %s4220_s24 = smov 112  }
  0x1e   : > { %3659 = vmatprep.subr.bf16.mxu0 %v4217_v3  ;;  %3679 = vmatprep.subr.bf16.mxu1 %v4217_v3  ;;  %v4074_v6 = vld [vmem:[%s4303_s22 + $0x20] sm:$0xff]   ;;  %v4075_v7 = vld [vmem:[%s4303_s22 + $0x18] sm:$0xff]   ;;  %v4076_v8 = vld [vmem:[%s4303_s22 + $0x10] sm:$0xff]   ;;  %s4221_s27 = smov 96   ;;  %s4222_s30 = smov 104   ;;  %vm785_vm1 = vcmask 64512  }
  0x1f   : > { %3660 = vmatpush3.bf16.msra.mxu0 %v4071_v2  ;;  %3675 = vmatprep.mubr.msk.bf16.mxu0 %vm4218_vm0, %v4217_v3  ;;  %v4077_v9 = vld [vmem:[%s4303_s22 + $0x8] sm:$0xff]   ;;  %v4078_v10 = vld [vmem:[%s4303_s22] sm:$0xff]   ;;  %v4388_v15 = vshrl.u32 %v661_v14, 7  ;;  %s4219_s22 = smov 120   ;;  %s4223_s12 = smov 64   ;;  %vm1276_vm2 = vcmask 1043456  }
  0x20   : > { %3661 = vmatprep.subr.bf16.mxu0 %v4217_v3  ;;  %3681 = vmatprep.mubr.msk.bf16.mxu1 %vm4218_vm0, %v4217_v3  ;;  %v4392_v17 = vld [vmem:[%s4338_s29] sm:$0xff]  ;;  %s4224_s17 = smov 8   ;;  %s4225_s2 = smov 16   ;;  %vm1682_vm3 = vcmask 130048   ;;  %vm1685_vm4 = vcmask 195584   ;;  %vm1705_vm5 = vcmask 261120  }
  0x21   : > { %v663_v16 = vsub.s32 0, %v4388_v15  ;;  %s4226_s21 = smov 24  }
  0x23   : > { %3662 = vmatpush3.bf16.msra.mxu0 %v4072_v4  ;;  %v4375_v11 = vld [vmem:[%s4955_s10] sm:$0xff]  ;;  %v4380_v12 = vld [vmem:[%s4955_s10 + $0x8] sm:$0xff]  ;;  %v664_v18 = vrot.slane %v4392_v17, %v663_v16 }
  0x24   : > { %3663 = vmatprep.subr.bf16.mxu0 %v4217_v3  ;;  %v660_v13 = vpack.c.bf16 %v4380_v12, %v4375_v11 }
  0x27   : > { %3664 = vmatpush3.bf16.msra.mxu0 %v4073_v5 }
  0x28   : > { %3665 = vmatprep.subr.bf16.mxu0 %v4217_v3 }
  0x2b   : > { %3666 = vmatpush3.bf16.msra.mxu0 %v4074_v6 }
  0x2c   : > { %3667 = vmatprep.subr.bf16.mxu0 %v4217_v3 }
  0x2f   : > { %3668 = vmatpush3.bf16.msra.mxu0 %v4075_v7 }
  0x30   : > { %3669 = vmatprep.subr.bf16.mxu0 %v4217_v3 }
  0x33   : > { %3670 = vmatpush3.bf16.msra.mxu0 %v4076_v8 }
  0x34   : > { %3671 = vmatprep.subr.bf16.mxu0 %v4217_v3 }
  0x37   : > { %3672 = vmatpush3.bf16.msra.mxu0 %v4077_v9 }
  0x38   : > { %3673 = vmatprep.subr.bf16.mxu0 %v4217_v3 }
  0x3b   : > { %3674 = vmatpush3.bf16.msra.mxu0 %v4078_v10 }
  0x3c   : > { %3703 = vmatprep.subr.bf16.mxu0 %v4217_v3 }
  0x3e   : > { %3676 = vmatmul.mubr.bf16.vlgmr.msra.gmra.mxu0 %v660_v13 }
  0x3f   : > { %3705 = vmatprep.mubr.msk.bf16.mxu0 %vm4218_vm0, %v4217_v3 }
  0xfe   : > { %v747_v19 = vpop.f32.mrf.mxu0 }
  0xff   : > { %v748_v20 = vadd.f32 %v747_v19, %v664_v18 }
 0x100   : > { %v3677_v21 = vpop.f32.mrf.mxu0 }
 0x101   : > { %756 = vrot.lane.b32.xlu0 %v748_v20, %s4219_s22  ;;  %v774_v26 = vpack.c.bf16 %v748_v20, %v748_v20 }
 0x102   : > { %v750_v22 = vpop.f32.mrf.mxu0 }
 0x103   : > { %v751_v23 = vadd.f32 %v750_v22, %v664_v18 }
 0x104   : > { %v3678_v24 = vpop.f32.mrf.mxu0 }
 0x105   : > { %758 = vrot.lane.b32.xlu0 %v751_v23, %s4219_s22  ;;  %v4001_v25 = vpack.i.bf16 %v751_v23, %v748_v20  ;;  %v4402_v27 = vpack.c.bf16 %v751_v23, %v751_v23 }
 0x107   : > { %4002 = vrot.lane.b32.xlu1 %v4001_v25, %s4220_s24 }
 0x109   : > { %783 = vrot.lane.b32.xlu0 %v774_v26, %s4221_s27 }
 0x10b   : > { %4007 = vrot.lane.b32.xlu1 %v4001_v25, %s4222_s30 }
 0x10f   : > { %833 = vrot.lane.b32.xlu1 %v4402_v27, %s4221_s27 }
 0x173   : > { %v757_v28 = vpop.permute.xlu0 %756 }
 0x174   : > { %v4406_v29 = vpack.c.bf16 %v757_v28, %v757_v28 }
 0x176   : > { %882 = vrot.lane.b32.xlu0 %v4406_v29, %s4221_s27 }
 0x177   : > { %v759_v30 = vpop.permute.xlu0 %758 }
 0x178   : > { %v4410_v31 = vpack.c.bf16 %v759_v30, %v759_v30 }
 0x179   : > { %v4003_v32 = vpop.permute.xlu1 %4002 }
 0x17a   : > { %v4005_v33 = vunpack.i.h.bf16 %v4003_v32  ;;  %v4004_v34 = vunpack.i.l.bf16 %v4003_v32  ;;  %931 = vrot.lane.b32.xlu1 %v4410_v31, %s4221_s27 }
 0x17b   : > { %v784_v35 = vpop.permute.xlu0 %783 }
 0x17c   : > { %v4414_v36 = vpack.c.bf16 %v4005_v33, %v4005_v33  ;;  %v4416_v37 = vpack.c.bf16 %v4004_v34, %v4004_v34  ;;  %v790_v38 = vsel %vm785_vm1, %v784_v35, 0 }
 0x17d   : > { %v4008_v39 = vpop.permute.xlu1 %4007  ;;  %3680 = vmatpush3.bf16.xpose.msra.mxu1 %v790_v38 }
 0x17e   : > { %v4010_v40 = vunpack.i.h.bf16 %v4008_v39  ;;  %v4009_v41 = vunpack.i.l.bf16 %v4008_v39  ;;  %980 = vrot.lane.b32.xlu0 %v4416_v37, %s4221_s27  ;;  %1029 = vrot.lane.b32.xlu1 %v4414_v36, %s4221_s27 }
 0x17f   : > { %3685 = vmatprep.subr.bf16.mxu1 %v4217_v3 }
 0x180   : > { %v4424_v42 = vpack.c.bf16 %v4010_v40, %v4010_v40  ;;  %v4426_v43 = vpack.c.bf16 %v4009_v41, %v4009_v41 }
 0x181   : > { %v834_v44 = vpop.permute.xlu1 %833 }
 0x182   : > { %1078 = vrot.lane.b32.xlu0 %v4426_v43, %s4221_s27  ;;  %1127 = vrot.lane.b32.xlu1 %v4424_v42, %s4221_s27  ;;  %v839_v45 = vsel %vm785_vm1, %v834_v44, 0 }
 0x184   : > { %3682 = vmatmul.mubr.msk.bf16.vlgmr.msra.gmra.mxu1 %vm785_vm1, %v774_v26 }
 0x185   : > { %3686 = vmatpush3.bf16.xpose.msra.mxu1 %v839_v45  ;;  %3687 = vmatprep.mubr.msk.bf16.mxu1 %vm4218_vm0, %v4217_v3 }
 0x186   : > { %1271 = vrot.lane.b32.xlu1 %v774_v26, %s4223_s12  ;;  %3691 = vmatprep.subr.bf16.mxu1 %v4217_v3 }
 0x18c   : > { %3688 = vmatmul.mubr.msk.bf16.vlgmr.msra.gmra.mxu1 %vm785_vm1, %v4402_v27 }
 0x18d   : > { %3693 = vmatprep.mubr.msk.bf16.mxu1 %vm4218_vm0, %v4217_v3 }
 0x1e8   : > { %v883_v46 = vpop.permute.xlu0 %882 }
 0x1e9   : > { %v888_v47 = vsel %vm785_vm1, %v883_v46, 0 }
 0x1ea   : > { %3692 = vmatpush3.bf16.xpose.msra.mxu1 %v888_v47 }
 0x1eb   : > { %3697 = vmatprep.subr.bf16.mxu1 %v4217_v3 }
 0x1ec   : > { %v932_v48 = vpop.permute.xlu1 %931 }
 0x1ed   : > { %v937_v50 = vsel %vm785_vm1, %v932_v48, 0 }
 0x1f0   : > { %v981_v49 = vpop.permute.xlu0 %980  ;;  %v1030_v52 = vpop.permute.xlu1 %1029 }
 0x1f1   : > { %v986_v51 = vsel %vm785_vm1, %v981_v49, 0  ;;  %3694 = vmatmul.mubr.msk.bf16.vlgmr.msra.gmra.mxu1 %vm785_vm1, %v4406_v29  ;;  %v1035_v55 = vsel %vm785_vm1, %v1030_v52, 0 }
 0x1f2   : > { %3698 = vmatpush3.bf16.xpose.msra.mxu1 %v937_v50  ;;  %3704 = vmatpush3.bf16.xpose.msra.mxu0 %v986_v51 }
 0x1f3   : > { %3699 = vmatprep.mubr.msk.bf16.mxu1 %vm4218_vm0, %v4217_v3  ;;  %3709 = vmatprep.subr.bf16.mxu1 %v4217_v3 }
 0x1f4   : > { %3715 = vmatprep.subr.bf16.mxu0 %v4217_v3  ;;  %v1079_v53 = vpop.permute.xlu0 %1078  ;;  %v1128_v54 = vpop.permute.xlu1 %1127 }
 0x1f5   : > { %v1084_v56 = vsel %vm785_vm1, %v1079_v53, 0  ;;  %v1133_v58 = vsel %vm785_vm1, %v1128_v54, 0 }
 0x1f8   : > { %v1272_v57 = vpop.permute.xlu1 %1271 }
 0x1f9   : > { %3700 = vmatmul.mubr.msk.bf16.vlgmr.msra.gmra.mxu1 %vm785_vm1, %v4410_v31  ;;  %3706 = vmatmul.mubr.msk.bf16.vlgmr.msra.gmra.mxu0 %vm785_vm1, %v4416_v37  ;;  %v1278_v59 = vsel %vm1276_vm2, %v1272_v57, 0 }
 0x1fa   : > { %3710 = vmatpush3.bf16.xpose.msra.mxu1 %v1035_v55  ;;  %3716 = vmatpush3.bf16.xpose.msra.mxu0 %v1084_v56 }
 0x1fb   : > { %3711 = vmatprep.mubr.msk.bf16.mxu1 %vm4218_vm0, %v4217_v3  ;;  %3717 = vmatprep.mubr.msk.bf16.mxu0 %vm4218_vm0, %v4217_v3 }
 0x1fc   : > { %3721 = vmatprep.subr.bf16.mxu1 %v4217_v3  ;;  %3727 = vmatprep.subr.bf16.mxu0 %v4217_v3 }
 0x201   : > { %3712 = vmatmul.mubr.msk.bf16.vlgmr.msra.gmra.mxu1 %vm785_vm1, %v4414_v36  ;;  %3718 = vmatmul.mubr.msk.bf16.vlgmr.msra.gmra.mxu0 %vm785_vm1, %v4426_v43 }
 0x202   : > { %3722 = vmatpush3.bf16.xpose.msra.mxu1 %v1133_v58  ;;  %3728 = vmatpush3.bf16.msra.mxu0 %v1278_v59 }
 0x203   : > { %3723 = vmatprep.mubr.msk.bf16.mxu1 %vm4218_vm0, %v4217_v3  ;;  %3733 = vmatprep.subr.bf16.mxu1 %v4217_v3 }
 0x204   : > { %3729 = vmatprep.mubr.msk.bf16.mxu0 %vm4218_vm0, %v4217_v3  ;;  %3739 = vmatprep.subr.bf16.mxu0 %v4217_v3 }
 0x209   : > { %3724 = vmatmul.mubr.msk.bf16.vlgmr.msra.gmra.mxu1 %vm785_vm1, %v4424_v42 }
 0x20a   : > { %3735 = vmatprep.mubr.msk.bf16.mxu1 %vm4218_vm0, %v4217_v3 }
 0x244   : > { %v826_v60 = vpop.f32.mrf.mxu1 }
 0x245   : > { %v1175_v61 = vsel %vm785_vm1, %v826_v60, -inf }
 0x246   : > { %1176 = vmax.xlane.f32.xlu0 %v1175_v61  ;;  %v3683_v62 = vpop.f32.mrf.mxu1 }
 0x248   : > { %v829_v63 = vpop.f32.mrf.mxu1 }
 0x24a   : > { %v3684_v0 = vpop.f32.mrf.mxu1 }
 0x24c   : > { %v875_v1 = vpop.f32.mrf.mxu1 }
 0x24d   : > { %v1178_v2 = vsel %vm785_vm1, %v875_v1, -inf }
 0x24e   : > { %1179 = vmax.xlane.f32.xlu1 %v1178_v2  ;;  %v3689_v4 = vpop.f32.mrf.mxu1 }
 0x250   : > { %v878_v5 = vpop.f32.mrf.mxu1 }
 0x252   : > { %v3690_v6 = vpop.f32.mrf.mxu1 }
 0x2b1   : > { %v924_v7 = vpop.f32.mrf.mxu1 }
 0x2b2   : > { %v1181_v8 = vsel %vm785_vm1, %v924_v7, -inf }
 0x2b3   : > { %1182 = vmax.xlane.f32.xlu0 %v1181_v8  ;;  %v3695_v9 = vpop.f32.mrf.mxu1 }
 0x2b5   : > { %v927_v10 = vpop.f32.mrf.mxu1 }
 0x2b7   : > { %v3696_v13 = vpop.f32.mrf.mxu1 }
 0x2b9   : > { %v973_v14 = vpop.f32.mrf.mxu1  ;;  %v1022_v18 = vpop.f32.mrf.mxu0 }
 0x2ba   : > { %v1184_v19 = vsel %vm785_vm1, %v973_v14, -inf  ;;  %v1187_v20 = vsel %vm785_vm1, %v1022_v18, -inf }
 0x2bb   : > { %1185 = vmax.xlane.f32.xlu0 %v1184_v19  ;;  %v3701_v21 = vpop.f32.mrf.mxu1  ;;  %1188 = vmax.xlane.f32.xlu1 %v1187_v20  ;;  %v3707_v22 = vpop.f32.mrf.mxu0 }
 0x2bd   : > { %v976_v23 = vpop.f32.mrf.mxu1  ;;  %v1025_v24 = vpop.f32.mrf.mxu0 }
 0x2bf   : > { %v3702_v25 = vpop.f32.mrf.mxu1  ;;  %v3708_v26 = vpop.f32.mrf.mxu0 }
 0x2c1   : > { %v4485_v28 = vpop.f32.mrf.mxu1  ;;  %v4487_v30 = vpop.f32.mrf.mxu0 }
 0x2c2   : > { %v1190_v32 = vsel %vm785_vm1, %v4485_v28, -inf  ;;  %v1193_v33 = vsel %vm785_vm1, %v4487_v30, -inf }
 0x2c3   : > { %1191 = vmax.xlane.f32.xlu0 %v1190_v32  ;;  %v3713_v34 = vpop.f32.mrf.mxu1  ;;  %1194 = vmax.xlane.f32.xlu1 %v1193_v33  ;;  %v3719_v35 = vpop.f32.mrf.mxu0 }
 0x2c5   : > { %v1074_v38 = vpop.f32.mrf.mxu1  ;;  %v1123_v39 = vpop.f32.mrf.mxu0 }
 0x2c7   : > { %v3714_v40 = vpop.f32.mrf.mxu1  ;;  %v3720_v41 = vpop.f32.mrf.mxu0 }
 0x2c9   : > { %v1169_v44 = vpop.f32.mrf.mxu1 }
 0x2ca   : > { %v1196_v45 = vsel %vm785_vm1, %v1169_v44, -inf }
 0x2cb   : > { %1197 = vmax.xlane.f32.xlu0 %v1196_v45  ;;  %v3725_v46 = vpop.f32.mrf.mxu1 }
 0x2cd   : > { %v1172_v47 = vpop.f32.mrf.mxu1 }
 0x2cf   : > { %v3726_v48 = vpop.f32.mrf.mxu1  ;;  %v1177_v49 = vpop.xlane.xlu0 %1176 }
 0x2d0   : > { %v1199_v50 = vsub.f32 %v826_v60, %v1177_v49 }
 0x2d2   : > { %v1207_v52 = vmul.f32 1.442695, %v1199_v50 }
 0x2d4   : > { %1368 = vrot.lane.b32.xlu1 %v4406_v29, %s4223_s12  ;;  %4115 = vpow2.f32 %v1207_v52 }
 0x2d7   : > { %v1180_v51 = vpop.xlane.xlu1 %1179 }
 0x2d8   : > { %1416 = vrot.lane.b32.xlu1 %v4410_v31, %s4223_s12  ;;  %v1200_v53 = vsub.f32 %v875_v1, %v1180_v51 }
 0x2da   : > { %v1209_v54 = vmul.f32 1.442695, %v1200_v53 }
 0x2dc   : > { %4117 = vpow2.f32 %v1209_v54 }
 0x2e1   : > { %1320 = vrot.lane.b32.xlu0 %v4402_v27, %s4223_s12  ;;  %v4116_v55 = vpop.eup %4115 }
 0x2e2   : > { %v1223_v56 = vsel %vm785_vm1, %v4116_v55, 0.0 }
 0x2e9   : > { %v4501_v57 = vpop.eup %4117 }
 0x2ea   : > { %v1226_v29 = vsel %vm785_vm1, %v4501_v57, 0.0 }
 0x2fc   : > { %1224 = vadd.xlane.f32.xlu1 %v1223_v56 }
 0x300   : > { %1227 = vadd.xlane.f32.xlu0 %v1226_v29 }
 0x33c   : > { %v1183_v31 = vpop.xlane.xlu0 %1182 }
 0x33d   : > { %v1201_v58 = vsub.f32 %v924_v7, %v1183_v31 }
 0x33f   : > { %v1211_v27 = vmul.f32 1.442695, %v1201_v58 }
 0x341   : > { %4119 = vpow2.f32 %v1211_v27 }
 0x344   : > { %v1186_v59 = vpop.xlane.xlu0 %1185  ;;  %v1189_v60 = vpop.xlane.xlu1 %1188 }
 0x345   : > { %v1202_v61 = vsub.f32 %v973_v14, %v1186_v59  ;;  %v1203_v62 = vsub.f32 %v1022_v18, %v1189_v60 }
 0x347   : > { %v1213_v63 = vmul.f32 1.442695, %v1202_v61  ;;  %v1215_v0 = vmul.f32 1.442695, %v1203_v62 }
 0x349   : > { %4121 = vpow2.f32 %v1213_v63 }
 0x34a   : > { %4123 = vpow2.f32 %v1215_v0 }
 0x34c   : > { %v1192_v4 = vpop.xlane.xlu0 %1191  ;;  %v1195_v14 = vpop.xlane.xlu1 %1194 }
 0x34d   : > { %v1204_v18 = vsub.f32 %v4485_v28, %v1192_v4  ;;  %v1205_v19 = vsub.f32 %v4487_v30, %v1195_v14 }
 0x34e   : > { %v4505_v1 = vpop.eup %4119 }
 0x34f   : > { %v1229_v2 = vsel %vm785_vm1, %v4505_v1, 0.0  ;;  %v1217_v20 = vmul.f32 1.442695, %v1204_v18  ;;  %v1219_v22 = vmul.f32 1.442695, %v1205_v19 }
 0x350   : > { %1230 = vadd.xlane.f32.xlu1 %v1229_v2  ;;  %v1369_v23 = vpop.permute.xlu1 %1368 }
 0x351   : > { %4125 = vpow2.f32 %v1217_v20  ;;  %v1374_v41 = vsel %vm1276_vm2, %v1369_v23, 0 }
 0x352   : > { %4127 = vpow2.f32 %v1219_v22 }
 0x354   : > { %v1198_v5 = vpop.xlane.xlu0 %1197  ;;  %v1417_v25 = vpop.permute.xlu1 %1416 }
 0x355   : > { %v1206_v21 = vsub.f32 %v1169_v44, %v1198_v5  ;;  %v1422_v46 = vsel %vm1276_vm2, %v1417_v25, 0 }
 0x356   : > { %v4509_v6 = vpop.eup %4121 }
 0x357   : > { %v4511_v7 = vpop.eup %4123  ;;  %v1232_v8 = vsel %vm785_vm1, %v4509_v6, 0.0  ;;  %v1221_v24 = vmul.f32 1.442695, %v1206_v21 }
 0x358   : > { %v1321_v9 = vpop.permute.xlu0 %1320  ;;  %1233 = vadd.xlane.f32.xlu0 %v1232_v8  ;;  %v1235_v10 = vsel %vm785_vm1, %v4511_v7, 0.0 }
 0x359   : > { %v1326_v13 = vsel %vm1276_vm2, %v1321_v9, 0  ;;  %1236 = vadd.xlane.f32.xlu1 %v1235_v10  ;;  %4129 = vpow2.f32 %v1221_v24 }
 0x35a   : > { %3734 = vmatpush3.bf16.msra.mxu1 %v1326_v13 }
 0x35b   : > { %3745 = vmatprep.subr.bf16.mxu1 %v4217_v3 }
 0x36a   : > { %1512 = vrot.lane.b32.xlu1 %v4414_v36, %s4223_s12  ;;  %v4525_v36 = vpop.eup %4125 }
 0x36b   : > { %v1238_v28 = vsel %vm785_vm1, %v4525_v36, 0.0 }
 0x36e   : > { %1464 = vrot.lane.b32.xlu0 %v4416_v37, %s4223_s12  ;;  %v4527_v37 = vpop.eup %4127 }
 0x36f   : > { %v4531_v30 = vpop.eup %4129  ;;  %v1241_v33 = vsel %vm785_vm1, %v4527_v37, 0.0 }
 0x370   : > { %v1244_v34 = vsel %vm785_vm1, %v4531_v30, 0.0 }
 0x385   : > { %v1225_v26 = vpop.xlane.xlu1 %1224 }
 0x386   : > { %4131 = vrcp.f32 %v1225_v26 }
 0x389   : > { %v1228_v32 = vpop.xlane.xlu0 %1227 }
 0x38a   : > { %4133 = vrcp.f32 %v1228_v32 }
 0x38d   : > { %1239 = vadd.xlane.f32.xlu0 %v1238_v28 }
 0x38e   : > { %1242 = vadd.xlane.f32.xlu1 %v1241_v33 }
 0x391   : > { %1245 = vadd.xlane.f32.xlu0 %v1244_v34 }
 0x393   : > { %v4132_v35 = vpop.eup %4131 }
 0x394   : > { %v1255_v38 = vmul.f32 %v4132_v35, %v4116_v55 }
 0x396   : > { %v1263_v39 = vpack.c.bf16 %v1255_v38, %v1255_v38 }
 0x397   : > { %v4134_v40 = vpop.eup %4133 }
 0x398   : > { %3730 = vmatmul.mubr.msk.bf16.vlgmr.msra.gmra.mxu0 %vm785_vm1, %v1263_v39  ;;  %v1256_v44 = vmul.f32 %v4134_v40, %v4501_v57  ;;  %v4079_v40 = vld [vmem:[%s4308_s25 + $0x8] sm:$0xff]  }
 0x399   : > { %3740 = vmatpush3.bf16.msra.mxu0 %v1374_v41  ;;  %3741 = vmatprep.mubr.msk.bf16.mxu0 %vm4218_vm0, %v4217_v3  ;;  %v4080_v41 = vld [vmem:[%s4308_s25] sm:$0xff]  }
 0x39a   : > { %v1264_v45 = vpack.c.bf16 %v1256_v44, %v1256_v44  ;;  %3751 = vmatprep.subr.bf16.mxu0 %v4217_v3 }
 0x39c   : > { %3736 = vmatmul.mubr.msk.bf16.vlgmr.msra.gmra.mxu1 %vm785_vm1, %v1264_v45 }
 0x39d   : > { %3746 = vmatpush3.bf16.msra.mxu1 %v1422_v46  ;;  %3747 = vmatprep.mubr.msk.bf16.mxu1 %vm4218_vm0, %v4217_v3 }
 0x39e   : > { %3757 = vmatprep.subr.bf16.mxu1 %v4217_v3 }
 0x39f   : > { %1608 = vrot.lane.b32.xlu1 %v4424_v42, %s4223_s12 }
 0x3a7   : > { %1560 = vrot.lane.b32.xlu0 %v4426_v43, %s4223_s12 }
 0x3d9   : > { %v1231_v47 = vpop.xlane.xlu1 %1230 }
 0x3da   : > { %4135 = vrcp.f32 %v1231_v47 }
 0x3e1   : > { %v1234_v48 = vpop.xlane.xlu0 %1233 }
 0x3e2   : > { %4137 = vrcp.f32 %v1234_v48  ;;  %v1237_v49 = vpop.xlane.xlu1 %1236 }
 0x3e3   : > { %4139 = vrcp.f32 %v1237_v49 }
 0x3e5   : > { %v1465_v52 = vpop.permute.xlu0 %1464 }
 0x3e6   : > { %v1470_v54 = vsel %vm1276_vm2, %v1465_v52, 0  ;;  %v1513_v56 = vpop.permute.xlu1 %1512 }
 0x3e7   : > { %v4136_v50 = vpop.eup %4135  ;;  %v1518_v58 = vsel %vm1276_vm2, %v1513_v56, 0 }
 0x3e8   : > { %v1257_v51 = vmul.f32 %v4136_v50, %v4505_v1 }
 0x3ea   : > { %v1265_v53 = vpack.c.bf16 %v1257_v51, %v1257_v51 }
 0x3ec   : > { %3742 = vmatmul.mubr.msk.bf16.vlgmr.msra.gmra.mxu0 %vm785_vm1, %v1265_v53 }
 0x3ed   : > { %3752 = vmatpush3.bf16.msra.mxu0 %v1470_v54  ;;  %3753 = vmatprep.mubr.msk.bf16.mxu0 %vm4218_vm0, %v4217_v3 }
 0x3ee   : > { %3763 = vmatprep.subr.bf16.mxu0 %v4217_v3 }
 0x3ef   : > { %v4138_v42 = vpop.eup %4137 }
 0x3f0   : > { %v4140_v43 = vpop.eup %4139  ;;  %v1258_v55 = vmul.f32 %v4138_v42, %v4509_v6 }
 0x3f1   : > { %v1259_v57 = vmul.f32 %v4140_v43, %v4511_v7 }
 0x3f2   : > { %v1266_v29 = vpack.c.bf16 %v1258_v55, %v1258_v55 }
 0x3f3   : > { %v1267_v31 = vpack.c.bf16 %v1259_v57, %v1259_v57 }
 0x3f4   : > { %3748 = vmatmul.mubr.msk.bf16.vlgmr.msra.gmra.mxu1 %vm785_vm1, %v1266_v29 }
 0x3f5   : > { %3754 = vmatmul.mubr.msk.bf16.vlgmr.msra.gmra.mxu0 %vm785_vm1, %v1267_v31  ;;  %3758 = vmatpush3.bf16.msra.mxu1 %v1518_v58 }
 0x3f6   : > { %3759 = vmatprep.mubr.msk.bf16.mxu1 %vm4218_vm0, %v4217_v3  ;;  %3765 = vmatprep.mubr.msk.bf16.mxu0 %vm4218_vm0, %v4217_v3 }
 0x3f7   : > { %3769 = vmatprep.subr.bf16.mxu1 %v4217_v3 }
 0x416   : > { %v1240_v27 = vpop.xlane.xlu0 %1239 }
 0x417   : > { %4141 = vrcp.f32 %v1240_v27  ;;  %v1243_v59 = vpop.xlane.xlu1 %1242 }
 0x418   : > { %4143 = vrcp.f32 %v1243_v59 }
 0x41a   : > { %v1246_v60 = vpop.xlane.xlu0 %1245 }
 0x41b   : > { %4145 = vrcp.f32 %v1246_v60  ;;  %v1609_v2 = vpop.permute.xlu1 %1608 }
 0x41c   : > { %v1614_v8 = vsel %vm1276_vm2, %v1609_v2, 0 }
 0x41e   : > { %v1561_v61 = vpop.permute.xlu0 %1560 }
 0x41f   : > { %v1566_v62 = vsel %vm1276_vm2, %v1561_v61, 0 }
 0x420   : > { %3764 = vmatpush3.bf16.msra.mxu0 %v1566_v62 }
 0x421   : > { %3775 = vmatprep.subr.bf16.mxu0 %v4217_v3 }
 0x424   : > { %v4142_v63 = vpop.eup %4141 }
 0x425   : > { %v4144_v0 = vpop.eup %4143  ;;  %v1260_v1 = vmul.f32 %v4142_v63, %v4525_v36 }
 0x426   : > { %v1261_v4 = vmul.f32 %v4144_v0, %v4527_v37 }
 0x427   : > { %v1268_v5 = vpack.c.bf16 %v1260_v1, %v1260_v1 }
 0x428   : > { %v4146_v6 = vpop.eup %4145  ;;  %v1269_v7 = vpack.c.bf16 %v1261_v4, %v1261_v4 }
 0x429   : > { %3760 = vmatmul.mubr.msk.bf16.vlgmr.msra.gmra.mxu1 %vm785_vm1, %v1268_v5  ;;  %v1262_v9 = vmul.f32 %v4146_v6, %v4531_v30  ;;  %v4081_v6 = vld [vmem:[%s4318_s11 + $0x38] sm:$0xff]  }
 0x42a   : > { %3766 = vmatmul.mubr.msk.bf16.vlgmr.msra.gmra.mxu0 %vm785_vm1, %v1269_v7  ;;  %3770 = vmatpush3.bf16.msra.mxu1 %v1614_v8  ;;  %v4082_v7 = vld [vmem:[%s4318_s11 + $0x30] sm:$0xff]   ;;  %v4083_v8 = vld [vmem:[%s4318_s11 + $0x28] sm:$0xff]  }
 0x42b   : > { %3771 = vmatprep.mubr.msk.bf16.mxu1 %vm4218_vm0, %v4217_v3  ;;  %3779 = vmatprep.mubr.msk.bf16.mxu0 %vm4218_vm0, %v4217_v3  ;;  %v1270_v10 = vpack.c.bf16 %v1262_v9, %v1262_v9  ;;  %v1691_v9 = vsub.s32 1, %v4388_v15 }
 0x42c   : > { %3783 = vmatprep.subr.bf16.mxu1 %v4217_v3  ;;  %3776 = vmatpush3.bf16.msra.mxu0 %v4079_v40  ;;  %v4094_v40 = vld [vmem:[%s4313_s28 + $0x10] sm:$0xff]  }
 0x42d   : > { %3777 = vmatprep.subr.bf16.mxu0 %v4217_v3 }
 0x430   : > { %3778 = vmatpush3.bf16.msra.mxu0 %v4080_v41  ;;  %v4095_v41 = vld [vmem:[%s4313_s28 + $0x8] sm:$0xff]  }
 0x431   : > { %3772 = vmatmul.mubr.msk.bf16.vlgmr.msra.gmra.mxu1 %vm785_vm1, %v1270_v10  ;;  %3803 = vmatprep.subr.bf16.mxu0 %v4217_v3  ;;  %v1692_v10 = vrot.slane %v4392_v17, %v1691_v9 }
 0x432   : > { %3799 = vmatprep.mubr.msk.bf16.mxu1 %vm4218_vm0, %v4217_v3 }
 0x458   : > { %v1314_v13 = vpop.f32.mrf.mxu0 }
 0x45a   : > { %v3731_v14 = vpop.f32.mrf.mxu0 }
 0x45c   : > { %v1317_v18 = vpop.f32.mrf.mxu0  ;;  %v1362_v19 = vpop.f32.mrf.mxu1 }
 0x45e   : > { %v3732_v20 = vpop.f32.mrf.mxu0  ;;  %v3737_v21 = vpop.f32.mrf.mxu1 }
 0x460   : > { %v1365_v22 = vpop.f32.mrf.mxu1 }
 0x462   : > { %v3738_v23 = vpop.f32.mrf.mxu1 }
 0x4ac   : > { %v1410_v24 = vpop.f32.mrf.mxu0 }
 0x4ae   : > { %v3743_v25 = vpop.f32.mrf.mxu0 }
 0x4af   : > { %v4084_v25 = vld [vmem:[%s4318_s11 + $0x20] sm:$0xff]  }
 0x4b0   : > { %v1413_v26 = vpop.f32.mrf.mxu0 }
 0x4b1   : > { %v4085_v26 = vld [vmem:[%s4313_s28 + $0x38] sm:$0xff]  }
 0x4b2   : > { %v3744_v36 = vpop.f32.mrf.mxu0  ;;  %3784 = vmatpush3.bf16.msra.mxu1 %v4085_v26 }
 0x4b3   : > { %3785 = vmatprep.subr.bf16.mxu1 %v4217_v3  ;;  %v4087_v36 = vld [vmem:[%s4313_s28 + $0x30] sm:$0xff]  }
 0x4b4   : > { %v1458_v32 = vpop.f32.mrf.mxu1 }
 0x4b5   : > { %v4011_v37 = vpack.i.bf16 %v1458_v32, %v1410_v24  ;;  %v1506_v28 = vpop.f32.mrf.mxu0  ;;  %v4088_v32 = vld [vmem:[%s4318_s11 + $0x10] sm:$0xff]  }
 0x4b6   : > { %v3749_v30 = vpop.f32.mrf.mxu1  ;;  %3786 = vmatpush3.bf16.msra.mxu1 %v4087_v36 }
 0x4b7   : > { %v3755_v33 = vpop.f32.mrf.mxu0  ;;  %4012 = vrot.lane.b32.xlu0 %v4011_v37, %s4224_s17  ;;  %3787 = vmatprep.subr.bf16.mxu1 %v4217_v3  ;;  %v4089_v37 = vld [vmem:[%s4313_s28 + $0x28] sm:$0xff]   ;;  %v4091_v30 = vld [vmem:[%s4313_s28 + $0x20] sm:$0xff]  }
 0x4b8   : > { %v1461_v34 = vpop.f32.mrf.mxu1  ;;  %v4092_v33 = vld [vmem:[%s4318_s11] sm:$0xff]  }
 0x4b9   : > { %v1509_v35 = vpop.f32.mrf.mxu0  ;;  %v568_v34 = vld [vmem:[%s4946_s1] sm:$0xff] }
 0x4ba   : > { %v3750_v38 = vpop.f32.mrf.mxu1  ;;  %3788 = vmatpush3.bf16.msra.mxu1 %v4089_v37  ;;  %v569_v35 = vld [vmem:[%s4946_s1 + $0x8] sm:$0xff] }
 0x4bb   : > { %v3756_v39 = vpop.f32.mrf.mxu0  ;;  %3789 = vmatprep.subr.bf16.mxu1 %v4217_v3  ;;  %v4093_v38 = vld [vmem:[%s4313_s28 + $0x18] sm:$0xff]  }
 0x4bc   : > { %v1884_v39 = vpack.c.bf16 %v569_v35, %v568_v34 }
 0x4be   : > { %3790 = vmatpush3.bf16.msra.mxu1 %v4091_v30 }
 0x4bf   : > { %3791 = vmatprep.subr.bf16.mxu1 %v4217_v3 }
 0x4c2   : > { %3792 = vmatpush3.bf16.msra.mxu1 %v4093_v38 }
 0x4c3   : > { %3793 = vmatprep.subr.bf16.mxu1 %v4217_v3 }
 0x4c6   : > { %3794 = vmatpush3.bf16.msra.mxu1 %v4094_v40 }
 0x4c7   : > { %3795 = vmatprep.subr.bf16.mxu1 %v4217_v3 }
 0x4ca   : > { %3796 = vmatpush3.bf16.msra.mxu1 %v4095_v41 }
 0x4cb   : > { %3797 = vmatprep.subr.bf16.mxu1 %v4217_v3 }
 0x4e9   : > { %v1554_v44 = vpop.f32.mrf.mxu1 }
 0x4ea   : > { %v4016_v45 = vpack.i.bf16 %v1554_v44, %v1506_v28  ;;  %v1602_v46 = vpop.f32.mrf.mxu0  ;;  %v4090_v28 = vld [vmem:[%s4318_s11 + $0x8] sm:$0xff]   ;;  %v4096_v44 = vld [vmem:[%s4313_s28] sm:$0xff]  }
 0x4eb   : > { %v3761_v47 = vpop.f32.mrf.mxu1  ;;  %3798 = vmatpush3.bf16.msra.mxu1 %v4096_v44 }
 0x4ec   : > { %v3767_v48 = vpop.f32.mrf.mxu0  ;;  %4017 = vrot.lane.b32.xlu1 %v4016_v45, %s4225_s2  ;;  %3823 = vmatprep.subr.bf16.mxu1 %v4217_v3 }
 0x4ed   : > { %v1557_v49 = vpop.f32.mrf.mxu1 }
 0x4ee   : > { %v1605_v50 = vpop.f32.mrf.mxu0 }
 0x4ef   : > { %v3762_v51 = vpop.f32.mrf.mxu1 }
 0x4f0   : > { %v3768_v52 = vpop.f32.mrf.mxu0 }
 0x4f1   : > { %v1650_v53 = vpop.f32.mrf.mxu1 }
 0x4f2   : > { %v4021_v54 = vpack.i.bf16 %v1650_v53, %v1602_v46 }
 0x4f3   : > { %v3773_v42 = vpop.f32.mrf.mxu1 }
 0x4f4   : > { %4022 = vrot.lane.b32.xlu0 %v4021_v54, %s4226_s21 }
 0x4f5   : > { %v1653_v43 = vpop.f32.mrf.mxu1 }
 0x4f7   : > { %v3774_v55 = vpop.f32.mrf.mxu1 }
 0x529   : > { %v4013_v56 = vpop.permute.xlu0 %4012 }
 0x52a   : > { %v4015_v29 = vunpack.i.h.bf16 %v4013_v56  ;;  %v4014_v31 = vunpack.i.l.bf16 %v4013_v56 }
 0x52c   : > { %v1681_v60 = vsel %vm785_vm1, %v1362_v19, %v4015_v29  ;;  %v1680_v61 = vsel %vm785_vm1, %v1314_v13, %v4014_v31 }
 0x55e   : > { %v4018_v57 = vpop.permute.xlu1 %4017 }
 0x55f   : > { %v4020_v58 = vunpack.i.h.bf16 %v4018_v57  ;;  %v4019_v27 = vunpack.i.l.bf16 %v4018_v57  ;;  %v1780_v57 = vsub.s32 7, %v4388_v15 }
 0x561   : > { %v1684_v0 = vsel %vm1682_vm3, %v1681_v60, %v4020_v58  ;;  %v1683_v1 = vsel %vm1682_vm3, %v1680_v61, %v4019_v27  ;;  %v1781_v31 = vrot.slane %v4392_v17, %v1780_v57  ;;  %v4660_v27 = vld [vmem:[%s4338_s29 + $0x8] sm:$0x1f] }
 0x566   : > { %v4023_v59 = vpop.permute.xlu0 %4022 }
 0x567   : > { %v4025_v62 = vunpack.i.h.bf16 %v4023_v59  ;;  %v4024_v63 = vunpack.i.l.bf16 %v4023_v59 }
 0x569   : > { %v1687_v2 = vsel %vm1685_vm4, %v1684_v0, %v4025_v62  ;;  %v1686_v4 = vsel %vm1685_vm4, %v1683_v1, %v4024_v63  ;;  %v1787_v62 = vrot.slane %v4660_v27, %v663_v16 }
 0x56a   : > { %v1688_v5 = vpack.c.bf16 %v1687_v2, %v1686_v4 }
 0x56c   : > { %3780 = vmatmul.mubr.msk.bf16.vlgmr.msra.gmra.mxu0 %vm1705_vm5, %v1688_v5 }
 0x56d   : > { %3819 = vmatprep.mubr.msk.bf16.mxu0 %vm4218_vm0, %v4217_v3  ;;  %3804 = vmatpush3.bf16.msra.mxu0 %v4081_v6  ;;  %v1887_v6 = vsub.s32 3, %v4388_v15 }
 0x56e   : > { %3805 = vmatprep.subr.bf16.mxu0 %v4217_v3 }
 0x56f   : > { %v1888_v16 = vrot.slane %v4392_v17, %v1887_v6 }
 0x571   : > { %3806 = vmatpush3.bf16.msra.mxu0 %v4082_v7 }
 0x572   : > { %3807 = vmatprep.subr.bf16.mxu0 %v4217_v3 }
 0x575   : > { %3808 = vmatpush3.bf16.msra.mxu0 %v4083_v8 }
 0x576   : > { %3809 = vmatprep.subr.bf16.mxu0 %v4217_v3 }
 0x579   : > { %3810 = vmatpush3.bf16.msra.mxu0 %v4084_v25 }
 0x57a   : > { %3811 = vmatprep.subr.bf16.mxu0 %v4217_v3 }
 0x62c   : > { %v1743_v13 = vpop.f32.mrf.mxu0 }
 0x62d   : > { %v1744_v14 = vadd.f32 %v1743_v13, %v1692_v10 }
 0x62e   : > { %v3781_v18 = vpop.f32.mrf.mxu0 }
 0x62f   : > { %v4611_v19 = vadd.f32 %v1744_v14, %v4375_v11 }
 0x630   : > { %v1746_v20 = vpop.f32.mrf.mxu0 }
 0x631   : > { %v1747_v21 = vadd.f32 %v1746_v20, %v1692_v10  ;;  %1752 = vadd.xlane.f32.xlu1 %v4611_v19  ;;  %v1758_v11 = vmul.f32 %v4611_v19, %v4611_v19 }
 0x632   : > { %v3782_v22 = vpop.f32.mrf.mxu0 }
 0x633   : > { %v4615_v23 = vadd.f32 %v1747_v21, %v4380_v12  ;;  %v4086_v12 = vld [vmem:[%s4318_s11 + $0x18] sm:$0xff]  }
 0x634   : > { %3812 = vmatpush3.bf16.msra.mxu0 %v4086_v12 }
 0x635   : > { %1754 = vadd.xlane.f32.xlu0 %v4615_v23  ;;  %v1759_v24 = vmul.f32 %v4615_v23, %v4615_v23  ;;  %3813 = vmatprep.subr.bf16.mxu0 %v4217_v3 }
 0x637   : > { %1762 = vadd.xlane.f32.xlu1 %v1759_v24 }
 0x638   : > { %3814 = vmatpush3.bf16.msra.mxu0 %v4088_v32 }
 0x639   : > { %1760 = vadd.xlane.f32.xlu0 %v1758_v11  ;;  %3815 = vmatprep.subr.bf16.mxu0 %v4217_v3  ;;  %v1793_v11 = vsub.s32 2, %v4388_v15 }
 0x63b   : > { %v1794_v26 = vrot.slane %v4392_v17, %v1793_v11 }
 0x63c   : > { %3816 = vmatpush3.bf16.msra.mxu0 %v4090_v28 }
 0x63d   : > { %3817 = vmatprep.subr.bf16.mxu0 %v4217_v3 }
 0x640   : > { %3818 = vmatpush3.bf16.msra.mxu0 %v4092_v33 }
 0x641   : > { %3829 = vmatprep.subr.bf16.mxu0 %v4217_v3 }
 0x643   : > { %3820 = vmatmul.mubr.bf16.vlgmr.msra.gmra.mxu0 %v1884_v39 }
 0x644   : > { %3831 = vmatprep.mubr.msk.bf16.mxu0 %vm4218_vm0, %v4217_v3 }
 0x6ba   : > { %v1753_v45 = vpop.xlane.xlu1 %1752 }
 0x6bb   : > { %v1756_v47 = vmul.f32 0.03125, %v1753_v45 }
 0x6bd   : > { %v1766_v53 = vmul.f32 %v1756_v47, %v1756_v47  ;;  %v1770_v59 = vsub.f32 %v4611_v19, %v1756_v47 }
 0x6be   : > { %v1755_v46 = vpop.xlane.xlu0 %1754 }
 0x6bf   : > { %v1757_v48 = vmul.f32 0.03125, %v1755_v46 }
 0x6c0   : > { %v1763_v49 = vpop.xlane.xlu1 %1762 }
 0x6c1   : > { %v1767_v50 = vmul.f32 %v1757_v48, %v1757_v48  ;;  %v1765_v51 = vmul.f32 0.03125, %v1763_v49  ;;  %v1771_v29 = vsub.f32 %v4615_v23, %v1757_v48 }
 0x6c2   : > { %v1761_v52 = vpop.xlane.xlu0 %1760 }
 0x6c3   : > { %v1769_v54 = vsub.f32 %v1765_v51, %v1767_v50  ;;  %v1764_v42 = vmul.f32 0.03125, %v1761_v52 }
 0x6c5   : > { %v1773_v43 = vadd.f32 1e-05, %v1769_v54  ;;  %v1768_v55 = vsub.f32 %v1764_v42, %v1766_v53 }
 0x6c7   : > { %4147 = vrsqrt.f32 %v1773_v43  ;;  %v1772_v56 = vadd.f32 1e-05, %v1768_v55 }
 0x6c9   : > { %4149 = vrsqrt.f32 %v1772_v56 }
 0x6d4   : > { %v4148_v58 = vpop.eup %4147 }
 0x6d5   : > { %v1777_v60 = vmul.f32 %v4148_v58, %v1771_v29 }
 0x6d6   : > { %v4150_v61 = vpop.eup %4149 }
 0x6d7   : > { %v1776_v63 = vmul.f32 %v4150_v61, %v1770_v59  ;;  %v1783_v0 = vmul.f32 %v1781_v31, %v1777_v60 }
 0x6d9   : > { %v1782_v1 = vmul.f32 %v1781_v31, %v1776_v63  ;;  %v4668_v4 = vadd.f32 %v1787_v62, %v1783_v0 }
 0x6db   : > { %v4666_v2 = vadd.f32 %v1787_v62, %v1782_v1 }
 0x6dd   : > { %v1790_v5 = vpack.c.bf16 %v4668_v4, %v4666_v2 }
 0x6df   : > { %3800 = vmatmul.mubr.bf16.vlgmr.msra.gmra.mxu1 %v1790_v5 }
 0x6e0   : > { %3825 = vmatprep.mubr.msk.bf16.mxu1 %vm4218_vm0, %v4217_v3 }
 0x703   : > { %v1971_v7 = vpop.f32.mrf.mxu0 }
 0x704   : > { %v1972_v8 = vadd.f32 %v1971_v7, %v1888_v16 }
 0x705   : > { %v3821_v10 = vpop.f32.mrf.mxu0 }
 0x706   : > { %v2026_v13 = vpack.c.bf16 %v1972_v8, %v1972_v8 }
 0x707   : > { %v1974_v14 = vpop.f32.mrf.mxu0 }
 0x708   : > { %v1975_v18 = vadd.f32 %v1974_v14, %v1888_v16  ;;  %v2038_v19 = vsel %vm785_vm1, %v2026_v13, 0 }
 0x709   : > { %v3822_v20 = vpop.f32.mrf.mxu0  ;;  %3824 = vmatpush3.bf16.xpose.msra.mxu1 %v2038_v19 }
 0x70a   : > { %v4026_v21 = vpack.i.bf16 %v1975_v18, %v1972_v8  ;;  %v2027_v22 = vpack.c.bf16 %v1975_v18, %v1975_v18  ;;  %3835 = vmatprep.subr.bf16.mxu1 %v4217_v3 }
 0x70c   : > { %4027 = vrot.lane.b32.xlu0 %v4026_v21, %s4219_s22  ;;  %v2084_v23 = vsel %vm785_vm1, %v2027_v22, 0 }
 0x70d   : > { %3830 = vmatpush3.bf16.xpose.msra.mxu0 %v2084_v23 }
 0x70e   : > { %3841 = vmatprep.subr.bf16.mxu0 %v4217_v3 }
 0x77e   : > { %v4028_v24 = vpop.permute.xlu0 %4027 }
 0x77f   : > { %v4029_v25 = vunpack.i.l.bf16 %v4028_v24  ;;  %v4030_v32 = vunpack.i.h.bf16 %v4028_v24 }
 0x781   : > { %v4687_v12 = vpack.c.bf16 %v4029_v25, %v4029_v25  ;;  %v4691_v35 = vpack.c.bf16 %v4030_v32, %v4030_v32 }
 0x783   : > { %v2130_v33 = vsel %vm785_vm1, %v4687_v12, 0  ;;  %v2176_v41 = vsel %vm785_vm1, %v4691_v35, 0 }
 0x79f   : > { %v1877_v36 = vpop.f32.mrf.mxu1 }
 0x7a0   : > { %v1878_v37 = vadd.f32 %v1877_v36, %v1794_v26 }
 0x7a1   : > { %v3801_v28 = vpop.f32.mrf.mxu1 }
 0x7a2   : > { %v1998_v30 = vpack.c.bf16 %v1878_v37, %v1878_v37 }
 0x7a3   : > { %v1880_v34 = vpop.f32.mrf.mxu1 }
 0x7a4   : > { %v1881_v38 = vadd.f32 %v1880_v34, %v1794_v26  ;;  %3826 = vmatmul.mubr.msk.bf16.vlgmr.msra.gmra.mxu1 %vm785_vm1, %v1998_v30 }
 0x7a5   : > { %v3802_v39 = vpop.f32.mrf.mxu1  ;;  %3836 = vmatpush3.bf16.xpose.msra.mxu1 %v2130_v33  ;;  %3837 = vmatprep.mubr.msk.bf16.mxu1 %vm4218_vm0, %v4217_v3 }
 0x7a6   : > { %v1999_v17 = vpack.c.bf16 %v1881_v38, %v1881_v38  ;;  %v4031_v40 = vpack.i.bf16 %v1881_v38, %v1878_v37  ;;  %3847 = vmatprep.subr.bf16.mxu1 %v4217_v3 }
 0x7a8   : > { %4032 = vrot.lane.b32.xlu1 %v4031_v40, %s4219_s22  ;;  %4042 = vrot.lane.b32.xlu0 %v4031_v40, %s4220_s24 }
 0x7a9   : > { %3832 = vmatmul.mubr.msk.bf16.vlgmr.msra.gmra.mxu0 %vm785_vm1, %v1999_v17 }
 0x7aa   : > { %3842 = vmatpush3.bf16.xpose.msra.mxu0 %v2176_v41  ;;  %3843 = vmatprep.mubr.msk.bf16.mxu0 %vm4218_vm0, %v4217_v3 }
 0x7ab   : > { %3853 = vmatprep.subr.bf16.mxu0 %v4217_v3 }
 0x7ac   : > { %4037 = vrot.lane.b32.xlu1 %v4026_v21, %s4220_s24  ;;  %4052 = vrot.lane.b32.xlu0 %v4031_v40, %s4222_s30 }
 0x7b0   : > { %4047 = vrot.lane.b32.xlu1 %v4026_v21, %s4222_s30  ;;  %2499 = vrot.lane.b32.xlu0 %v2026_v13, %s4221_s27 }
 0x7b4   : > { %2548 = vrot.lane.b32.xlu1 %v2027_v22, %s4221_s27 }
 0x81a   : > { %v4033_v44 = vpop.permute.xlu1 %4032  ;;  %v4043_v54 = vpop.permute.xlu0 %4042 }
 0x81b   : > { %v4035_v45 = vunpack.i.h.bf16 %v4033_v44  ;;  %v4034_v46 = vunpack.i.l.bf16 %v4033_v44  ;;  %v4044_v29 = vunpack.i.l.bf16 %v4043_v54  ;;  %v4045_v31 = vunpack.i.h.bf16 %v4043_v54 }
 0x81d   : > { %v2001_v47 = vpack.c.bf16 %v4035_v45, %v4035_v45  ;;  %v2000_v48 = vpack.c.bf16 %v4034_v46, %v4034_v46  ;;  %v2002_v60 = vpack.c.bf16 %v4044_v29, %v4044_v29  ;;  %v2003_v61 = vpack.c.bf16 %v4045_v31, %v4045_v31 }
 0x81e   : > { %v4038_v49 = vpop.permute.xlu1 %4037  ;;  %v4053_v62 = vpop.permute.xlu0 %4052 }
 0x81f   : > { %v4040_v50 = vunpack.i.h.bf16 %v4038_v49  ;;  %v4039_v51 = vunpack.i.l.bf16 %v4038_v49  ;;  %3838 = vmatmul.mubr.msk.bf16.vlgmr.msra.gmra.mxu1 %vm785_vm1, %v2000_v48  ;;  %3844 = vmatmul.mubr.msk.bf16.vlgmr.msra.gmra.mxu0 %vm785_vm1, %v2001_v47  ;;  %v4054_v1 = vunpack.i.l.bf16 %v4053_v62  ;;  %v4055_v5 = vunpack.i.h.bf16 %v4053_v62 }
 0x820   : > { %3849 = vmatprep.mubr.msk.bf16.mxu1 %vm4218_vm0, %v4217_v3  ;;  %3855 = vmatprep.mubr.msk.bf16.mxu0 %vm4218_vm0, %v4217_v3 }
 0x821   : > { %v4716_v52 = vpack.c.bf16 %v4040_v50, %v4040_v50  ;;  %v4718_v53 = vpack.c.bf16 %v4039_v51, %v4039_v51  ;;  %v2004_v7 = vpack.c.bf16 %v4054_v1, %v4054_v1  ;;  %v2005_v10 = vpack.c.bf16 %v4055_v5, %v4055_v5 }
 0x822   : > { %v4048_v42 = vpop.permute.xlu1 %4047  ;;  %v2500_v16 = vpop.permute.xlu0 %2499 }
 0x823   : > { %v4049_v43 = vunpack.i.l.bf16 %v4048_v42  ;;  %v2222_v55 = vsel %vm785_vm1, %v4718_v53, 0  ;;  %v4050_v56 = vunpack.i.h.bf16 %v4048_v42  ;;  %v2268_v57 = vsel %vm785_vm1, %v4716_v52, 0 }
 0x824   : > { %3848 = vmatpush3.bf16.xpose.msra.mxu1 %v2222_v55  ;;  %3854 = vmatpush3.bf16.xpose.msra.mxu0 %v2268_v57  ;;  %v2505_v13 = vsel %vm1276_vm2, %v2500_v16, 0 }
 0x825   : > { %3859 = vmatprep.subr.bf16.mxu1 %v4217_v3  ;;  %3865 = vmatprep.subr.bf16.mxu0 %v4217_v3  ;;  %v4726_v58 = vpack.c.bf16 %v4049_v43, %v4049_v43  ;;  %v4728_v59 = vpack.c.bf16 %v4050_v56, %v4050_v56 }
 0x826   : > { %v2549_v8 = vpop.permute.xlu1 %2548 }
 0x827   : > { %v2314_v63 = vsel %vm785_vm1, %v4726_v58, 0  ;;  %v2360_v0 = vsel %vm785_vm1, %v4728_v59, 0  ;;  %v2554_v14 = vsel %vm1276_vm2, %v2549_v8, 0 }
 0x82b   : > { %3850 = vmatmul.mubr.msk.bf16.vlgmr.msra.gmra.mxu1 %vm785_vm1, %v2002_v60  ;;  %3856 = vmatmul.mubr.msk.bf16.vlgmr.msra.gmra.mxu0 %vm785_vm1, %v2003_v61 }
 0x82c   : > { %3860 = vmatpush3.bf16.xpose.msra.mxu1 %v2314_v63  ;;  %3866 = vmatpush3.bf16.xpose.msra.mxu0 %v2360_v0 }
 0x82d   : > { %3861 = vmatprep.mubr.msk.bf16.mxu1 %vm4218_vm0, %v4217_v3  ;;  %3867 = vmatprep.mubr.msk.bf16.mxu0 %vm4218_vm0, %v4217_v3 }
 0x82e   : > { %3871 = vmatprep.subr.bf16.mxu1 %v4217_v3  ;;  %3877 = vmatprep.subr.bf16.mxu0 %v4217_v3 }
 0x833   : > { %3862 = vmatmul.mubr.msk.bf16.vlgmr.msra.gmra.mxu1 %vm785_vm1, %v2004_v7  ;;  %3868 = vmatmul.mubr.msk.bf16.vlgmr.msra.gmra.mxu0 %vm785_vm1, %v2005_v10 }
 0x834   : > { %3872 = vmatpush3.bf16.msra.mxu1 %v2505_v13  ;;  %3878 = vmatpush3.bf16.msra.mxu0 %v2554_v14 }
 0x835   : > { %3873 = vmatprep.mubr.msk.bf16.mxu1 %vm4218_vm0, %v4217_v3  ;;  %3879 = vmatprep.mubr.msk.bf16.mxu0 %vm4218_vm0, %v4217_v3 }
 0x836   : > { %3883 = vmatprep.subr.bf16.mxu1 %v4217_v3  ;;  %3889 = vmatprep.subr.bf16.mxu0 %v4217_v3 }
 0x864   : > { %v2074_v18 = vpop.f32.mrf.mxu1 }
 0x865   : > { %v2402_v19 = vsel %vm785_vm1, %v2074_v18, -inf }
 0x866   : > { %v3827_v20 = vpop.f32.mrf.mxu1  ;;  %2403 = vmax.xlane.f32.xlu1 %v2402_v19 }
 0x868   : > { %v2077_v21 = vpop.f32.mrf.mxu1 }
 0x869   : > { %v2120_v22 = vpop.f32.mrf.mxu0 }
 0x86a   : > { %v3828_v23 = vpop.f32.mrf.mxu1  ;;  %v2405_v24 = vsel %vm785_vm1, %v2120_v22, -inf }
 0x86b   : > { %2406 = vmax.xlane.f32.xlu0 %v2405_v24  ;;  %v3833_v25 = vpop.f32.mrf.mxu0 }
 0x86d   : > { %v2123_v26 = vpop.f32.mrf.mxu0 }
 0x86f   : > { %v3834_v36 = vpop.f32.mrf.mxu0 }
 0x8df   : > { %v2166_v32 = vpop.f32.mrf.mxu1  ;;  %v2212_v37 = vpop.f32.mrf.mxu0 }
 0x8e0   : > { %v2408_v28 = vsel %vm785_vm1, %v2166_v32, -inf  ;;  %v2411_v30 = vsel %vm785_vm1, %v2212_v37, -inf }
 0x8e1   : > { %v3839_v33 = vpop.f32.mrf.mxu1  ;;  %2409 = vmax.xlane.f32.xlu0 %v2408_v28  ;;  %2412 = vmax.xlane.f32.xlu1 %v2411_v30  ;;  %v3845_v34 = vpop.f32.mrf.mxu0 }
 0x8e3   : > { %v2169_v38 = vpop.f32.mrf.mxu1  ;;  %v2215_v39 = vpop.f32.mrf.mxu0 }
 0x8e5   : > { %v3840_v17 = vpop.f32.mrf.mxu1  ;;  %v3846_v40 = vpop.f32.mrf.mxu0 }
 0x8eb   : > { %v4756_v41 = vpop.f32.mrf.mxu1  ;;  %v2304_v44 = vpop.f32.mrf.mxu0 }
 0x8ec   : > { %v2414_v45 = vsel %vm785_vm1, %v4756_v41, -inf  ;;  %v2417_v47 = vsel %vm785_vm1, %v2304_v44, -inf }
 0x8ed   : > { %v3851_v46 = vpop.f32.mrf.mxu1  ;;  %2415 = vmax.xlane.f32.xlu0 %v2414_v45  ;;  %2418 = vmax.xlane.f32.xlu1 %v2417_v47  ;;  %v3857_v48 = vpop.f32.mrf.mxu0 }
 0x8ef   : > { %v2261_v49 = vpop.f32.mrf.mxu1  ;;  %v2307_v50 = vpop.f32.mrf.mxu0 }
 0x8f0   : > { %v2404_v63 = vpop.xlane.xlu1 %2403 }
 0x8f1   : > { %v3852_v51 = vpop.f32.mrf.mxu1  ;;  %v3858_v54 = vpop.f32.mrf.mxu0  ;;  %v2426_v1 = vsub.f32 %v2074_v18, %v2404_v63 }
 0x8f3   : > { %v4761_v42 = vpop.f32.mrf.mxu1  ;;  %v2396_v43 = vpop.f32.mrf.mxu0  ;;  %v2434_v16 = vmul.f32 1.442695, %v2426_v1 }
 0x8f4   : > { %v2420_v55 = vsel %vm785_vm1, %v4761_v42, -inf  ;;  %v2423_v57 = vsel %vm785_vm1, %v2396_v43, -inf  ;;  %v2407_v0 = vpop.xlane.xlu0 %2406 }
 0x8f5   : > { %v3863_v56 = vpop.f32.mrf.mxu1  ;;  %2421 = vmax.xlane.f32.xlu0 %v2420_v55  ;;  %2424 = vmax.xlane.f32.xlu1 %v2423_v57  ;;  %v3869_v29 = vpop.f32.mrf.mxu0  ;;  %v2427_v5 = vsub.f32 %v2120_v22, %v2407_v0  ;;  %4151 = vpow2.f32 %v2434_v16 }
 0x8f7   : > { %v2353_v31 = vpop.f32.mrf.mxu1  ;;  %v2399_v60 = vpop.f32.mrf.mxu0  ;;  %v2436_v7 = vmul.f32 1.442695, %v2427_v5 }
 0x8f9   : > { %v3864_v61 = vpop.f32.mrf.mxu1  ;;  %v3870_v62 = vpop.f32.mrf.mxu0  ;;  %4153 = vpow2.f32 %v2436_v7 }
 0x902   : > { %v4152_v8 = vpop.eup %4151 }
 0x903   : > { %v2450_v13 = vsel %vm785_vm1, %v4152_v8, 0.0 }
 0x906   : > { %2597 = vrot.lane.b32.xlu1 %v4687_v12, %s4221_s27  ;;  %v4154_v10 = vpop.eup %4153 }
 0x907   : > { %v2453_v14 = vsel %vm785_vm1, %v4154_v10, 0.0 }
 0x90b   : > { %2646 = vrot.lane.b32.xlu0 %v4691_v35, %s4221_s27 }
 0x92a   : > { %2451 = vadd.xlane.f32.xlu0 %v2450_v13  ;;  %2454 = vadd.xlane.f32.xlu1 %v2453_v14 }
 0x93b   : > { %2695 = vrot.lane.b32.xlu1 %v4718_v53, %s4221_s27 }
 0x96a   : > { %v2410_v12 = vpop.xlane.xlu0 %2409  ;;  %v2413_v35 = vpop.xlane.xlu1 %2412 }
 0x96b   : > { %v2428_v19 = vsub.f32 %v2166_v32, %v2410_v12  ;;  %v2429_v18 = vsub.f32 %v2212_v37, %v2413_v35 }
 0x96d   : > { %v2438_v20 = vmul.f32 1.442695, %v2428_v19  ;;  %v2440_v21 = vmul.f32 1.442695, %v2429_v18 }
 0x96f   : > { %4155 = vpow2.f32 %v2438_v20 }
 0x970   : > { %4157 = vpow2.f32 %v2440_v21 }
 0x976   : > { %v2419_v22 = vpop.xlane.xlu1 %2418  ;;  %v2416_v39 = vpop.xlane.xlu0 %2415 }
 0x977   : > { %v2431_v23 = vsub.f32 %v2304_v44, %v2419_v22  ;;  %v2430_v17 = vsub.f32 %v4756_v41, %v2416_v39 }
 0x979   : > { %v2444_v24 = vmul.f32 1.442695, %v2431_v23  ;;  %v2442_v44 = vmul.f32 1.442695, %v2430_v17 }
 0x97b   : > { %4159 = vpow2.f32 %v2444_v24 }
 0x97c   : > { %v4774_v25 = vpop.eup %4155 }
 0x97d   : > { %v4776_v26 = vpop.eup %4157  ;;  %v2456_v36 = vsel %vm785_vm1, %v4774_v25, 0.0 }
 0x97e   : > { %2457 = vadd.xlane.f32.xlu0 %v2456_v36  ;;  %v2459_v53 = vsel %vm785_vm1, %v4776_v26, 0.0  ;;  %v2425_v32 = vpop.xlane.xlu1 %2424  ;;  %v2422_v40 = vpop.xlane.xlu0 %2421 }
 0x97f   : > { %2460 = vadd.xlane.f32.xlu1 %v2459_v53  ;;  %v2433_v37 = vsub.f32 %v2396_v43, %v2425_v32  ;;  %v2432_v45 = vsub.f32 %v4761_v42, %v2422_v40 }
 0x981   : > { %v2448_v28 = vmul.f32 1.442695, %v2433_v37  ;;  %v2446_v46 = vmul.f32 1.442695, %v2432_v45 }
 0x982   : > { %v2647_v48 = vpop.permute.xlu0 %2646  ;;  %v2598_v49 = vpop.permute.xlu1 %2597 }
 0x983   : > { %4161 = vpow2.f32 %v2448_v28  ;;  %v2603_v29 = vsel %vm1276_vm2, %v2598_v49, 0  ;;  %v2652_v31 = vsel %vm1276_vm2, %v2647_v48, 0 }
 0x984   : > { %4163 = vpow2.f32 %v2442_v44 }
 0x985   : > { %4165 = vpow2.f32 %v2446_v46 }
 0x988   : > { %v4782_v30 = vpop.eup %4159 }
 0x989   : > { %v2465_v33 = vsel %vm785_vm1, %v4782_v30, 0.0 }
 0x98a   : > { %2466 = vadd.xlane.f32.xlu1 %v2465_v33 }
 0x990   : > { %v4786_v34 = vpop.eup %4161 }
 0x991   : > { %v2471_v38 = vsel %vm785_vm1, %v4786_v34, 0.0  ;;  %v4796_v47 = vpop.eup %4163 }
 0x992   : > { %2472 = vadd.xlane.f32.xlu1 %v2471_v38  ;;  %v4800_v50 = vpop.eup %4165 }
 0x993   : > { %v2468_v54 = vsel %vm785_vm1, %v4800_v50, 0.0 }
 0x994   : > { %2744 = vrot.lane.b32.xlu0 %v4716_v52, %s4221_s27  ;;  %v2462_v52 = vsel %vm785_vm1, %v4796_v47, 0.0 }
 0x9a3   : > { %2793 = vrot.lane.b32.xlu1 %v4726_v58, %s4221_s27 }
 0x9b3   : > { %2463 = vadd.xlane.f32.xlu0 %v2462_v52  ;;  %v2452_v41 = vpop.xlane.xlu0 %2451  ;;  %v2455_v51 = vpop.xlane.xlu1 %2454 }
 0x9b4   : > { %4167 = vrcp.f32 %v2452_v41 }
 0x9b5   : > { %4169 = vrcp.f32 %v2455_v51 }
 0x9b7   : > { %2469 = vadd.xlane.f32.xlu0 %v2468_v54  ;;  %v2696_v60 = vpop.permute.xlu1 %2695 }
 0x9b8   : > { %v2701_v13 = vsel %vm1276_vm2, %v2696_v60, 0 }
 0x9c1   : > { %v4168_v58 = vpop.eup %4167 }
 0x9c2   : > { %v4170_v42 = vpop.eup %4169  ;;  %v2482_v43 = vmul.f32 %v4168_v58, %v4152_v8 }
 0x9c3   : > { %v2483_v55 = vmul.f32 %v4170_v42, %v4154_v10 }
 0x9c4   : > { %v2490_v56 = vpack.c.bf16 %v2482_v43, %v2482_v43 }
 0x9c5   : > { %v2491_v57 = vpack.c.bf16 %v2483_v55, %v2483_v55 }
 0x9c6   : > { %3874 = vmatmul.mubr.msk.bf16.vlgmr.msra.gmra.mxu1 %vm785_vm1, %v2490_v56 }
 0x9c7   : > { %3880 = vmatmul.mubr.msk.bf16.vlgmr.msra.gmra.mxu0 %vm785_vm1, %v2491_v57  ;;  %3884 = vmatpush3.bf16.msra.mxu1 %v2603_v29  ;;  %v4097_v57 = vld [vmem:[%s4323_s20 + $0x8] sm:$0xff]  }
 0x9c8   : > { %3890 = vmatpush3.bf16.msra.mxu0 %v2652_v31  ;;  %3885 = vmatprep.mubr.msk.bf16.mxu1 %vm4218_vm0, %v4217_v3 }
 0x9c9   : > { %3891 = vmatprep.mubr.msk.bf16.mxu0 %vm4218_vm0, %v4217_v3  ;;  %3895 = vmatprep.subr.bf16.mxu1 %v4217_v3 }
 0x9ca   : > { %3901 = vmatprep.subr.bf16.mxu0 %v4217_v3 }
 0x9cd   : > { %2842 = vrot.lane.b32.xlu0 %v4728_v59, %s4221_s27 }
 0xa07   : > { %v2458_v61 = vpop.xlane.xlu0 %2457 }
 0xa08   : > { %4171 = vrcp.f32 %v2458_v61  ;;  %v2461_v62 = vpop.xlane.xlu1 %2460 }
 0xa09   : > { %4173 = vrcp.f32 %v2461_v62 }
 0xa0b   : > { %v2745_v7 = vpop.permute.xlu0 %2744 }
 0xa0c   : > { %v2750_v59 = vsel %vm1276_vm2, %v2745_v7, 0 }
 0xa13   : > { %v2467_v63 = vpop.xlane.xlu1 %2466 }
 0xa14   : > { %4175 = vrcp.f32 %v2467_v63  ;;  %v4098_v63 = vld [vmem:[%s4323_s20] sm:$0xff]  }
 0xa15   : > { %v4172_v0 = vpop.eup %4171 }
 0xa16   : > { %v4174_v1 = vpop.eup %4173  ;;  %v2484_v5 = vmul.f32 %v4172_v0, %v4774_v25 }
 0xa17   : > { %v2485_v16 = vmul.f32 %v4174_v1, %v4776_v26 }
 0xa18   : > { %v2492_v8 = vpack.c.bf16 %v2484_v5, %v2484_v5 }
 0xa19   : > { %v2493_v10 = vpack.c.bf16 %v2485_v16, %v2485_v16 }
 0xa1a   : > { %3886 = vmatmul.mubr.msk.bf16.vlgmr.msra.gmra.mxu1 %vm785_vm1, %v2492_v8 }
 0xa1b   : > { %3892 = vmatmul.mubr.msk.bf16.vlgmr.msra.gmra.mxu0 %vm785_vm1, %v2493_v10  ;;  %3896 = vmatpush3.bf16.msra.mxu1 %v2701_v13  ;;  %v2473_v19 = vpop.xlane.xlu1 %2472 }
 0xa1c   : > { %3902 = vmatpush3.bf16.msra.mxu0 %v2750_v59  ;;  %3903 = vmatprep.mubr.msk.bf16.mxu0 %vm4218_vm0, %v4217_v3  ;;  %4177 = vrcp.f32 %v2473_v19 }
 0xa1d   : > { %3913 = vmatprep.subr.bf16.mxu0 %v4217_v3  ;;  %3897 = vmatprep.mubr.msk.bf16.mxu1 %vm4218_vm0, %v4217_v3 }
 0xa1e   : > { %3907 = vmatprep.subr.bf16.mxu1 %v4217_v3 }
 0xa1f   : > { %v2794_v53 = vpop.permute.xlu1 %2793 }
 0xa20   : > { %v2799_v28 = vsel %vm1276_vm2, %v2794_v53, 0 }
 0xa21   : > { %v4176_v14 = vpop.eup %4175 }
 0xa22   : > { %v2487_v12 = vmul.f32 %v4176_v14, %v4782_v30 }
 0xa24   : > { %v2495_v35 = vpack.c.bf16 %v2487_v12, %v2487_v12 }
 0xa26   : > { %3904 = vmatmul.mubr.msk.bf16.vlgmr.msra.gmra.mxu0 %vm785_vm1, %v2495_v35 }
 0xa27   : > { %3915 = vmatprep.mubr.msk.bf16.mxu0 %vm4218_vm0, %v4217_v3 }
 0xa29   : > { %v4178_v20 = vpop.eup %4177 }
 0xa2a   : > { %v2489_v22 = vmul.f32 %v4178_v20, %v4786_v34 }
 0xa2c   : > { %v2497_v25 = vpack.c.bf16 %v2489_v22, %v2489_v22 }
 0xa3c   : > { %v2464_v18 = vpop.xlane.xlu0 %2463 }
 0xa3d   : > { %4179 = vrcp.f32 %v2464_v18 }
 0xa40   : > { %v2470_v21 = vpop.xlane.xlu0 %2469 }
 0xa41   : > { %4181 = vrcp.f32 %v2470_v21 }
 0xa44   : > { %v2843_v23 = vpop.permute.xlu0 %2842 }
 0xa45   : > { %v2848_v24 = vsel %vm1276_vm2, %v2843_v23, 0 }
 0xa46   : > { %3914 = vmatpush3.bf16.msra.mxu0 %v2848_v24 }
 0xa47   : > { %3927 = vmatprep.subr.bf16.mxu0 %v4217_v3 }
 0xa49   : > { %3916 = vmatmul.mubr.msk.bf16.vlgmr.msra.gmra.mxu0 %vm785_vm1, %v2497_v25 }
 0xa4a   : > { %v4180_v26 = vpop.eup %4179  ;;  %3943 = vmatprep.mubr.msk.bf16.mxu0 %vm4218_vm0, %v4217_v3 }
 0xa4b   : > { %v2486_v36 = vmul.f32 %v4180_v26, %v4796_v47 }
 0xa4d   : > { %v2494_v32 = vpack.c.bf16 %v2486_v36, %v2486_v36 }
 0xa4e   : > { %v4182_v37 = vpop.eup %4181 }
 0xa4f   : > { %3898 = vmatmul.mubr.msk.bf16.vlgmr.msra.gmra.mxu1 %vm785_vm1, %v2494_v32  ;;  %v2488_v30 = vmul.f32 %v4182_v37, %v4800_v50 }
 0xa50   : > { %3908 = vmatpush3.bf16.msra.mxu1 %v2799_v28  ;;  %3909 = vmatprep.mubr.msk.bf16.mxu1 %vm4218_vm0, %v4217_v3  ;;  %v2923_v28 = vsub.s32 4, %v4388_v15 }
 0xa51   : > { %3919 = vmatprep.subr.bf16.mxu1 %v4217_v3  ;;  %v2496_v33 = vpack.c.bf16 %v2488_v30, %v2488_v30  ;;  %v4866_v30 = vld [vmem:[%s4338_s29] sm:$0xff] }
 0xa57   : > { %3910 = vmatmul.mubr.msk.bf16.vlgmr.msra.gmra.mxu1 %vm785_vm1, %v2496_v33  ;;  %v2924_v33 = vrot.slane %v4866_v30, %v2923_v28 }
 0xa58   : > { %3923 = vmatprep.mubr.msk.bf16.mxu1 %vm4218_vm0, %v4217_v3  ;;  %3920 = vmatpush3.bf16.msra.mxu1 %v4097_v57 }
 0xa59   : > { %3921 = vmatprep.subr.bf16.mxu1 %v4217_v3 }
 0xa5c   : > { %3922 = vmatpush3.bf16.msra.mxu1 %v4098_v63 }
 0xa5d   : > { %3947 = vmatprep.subr.bf16.mxu1 %v4217_v3 }
 0xa86   : > { %v2541_v34 = vpop.f32.mrf.mxu1 }
 0xa87   : > { %v2590_v38 = vpop.f32.mrf.mxu0 }
 0xa88   : > { %v3875_v39 = vpop.f32.mrf.mxu1 }
 0xa89   : > { %v3881_v17 = vpop.f32.mrf.mxu0 }
 0xa8a   : > { %v2544_v40 = vpop.f32.mrf.mxu1 }
 0xa8b   : > { %v2593_v44 = vpop.f32.mrf.mxu0 }
 0xa8c   : > { %v3876_v45 = vpop.f32.mrf.mxu1 }
 0xa8d   : > { %v3882_v46 = vpop.f32.mrf.mxu0 }
 0xada   : > { %v2639_v47 = vpop.f32.mrf.mxu1 }
 0xadb   : > { %v2688_v48 = vpop.f32.mrf.mxu0 }
 0xadc   : > { %v4056_v49 = vpack.i.bf16 %v2688_v48, %v2639_v47  ;;  %v3887_v52 = vpop.f32.mrf.mxu1  ;;  %v4099_v48 = vld [vmem:[%s4328_s23 + $0x38] sm:$0xff]  }
 0xadd   : > { %v3893_v50 = vpop.f32.mrf.mxu0  ;;  %3928 = vmatpush3.bf16.msra.mxu0 %v4099_v48  ;;  %v4102_v52 = vld [vmem:[%s4328_s23 + $0x20] sm:$0xff]  }
 0xade   : > { %4057 = vrot.lane.b32.xlu1 %v4056_v49, %s4224_s17  ;;  %v2642_v41 = vpop.f32.mrf.mxu1  ;;  %3929 = vmatprep.subr.bf16.mxu0 %v4217_v3  ;;  %v4100_v49 = vld [vmem:[%s4328_s23 + $0x30] sm:$0xff]   ;;  %v4103_v50 = vld [vmem:[%s4328_s23 + $0x18] sm:$0xff]  }
 0xadf   : > { %v2691_v51 = vpop.f32.mrf.mxu0  ;;  %v4104_v41 = vld [vmem:[%s4328_s23 + $0x10] sm:$0xff]  }
 0xae0   : > { %v3888_v54 = vpop.f32.mrf.mxu1  ;;  %v4105_v51 = vld [vmem:[%s4328_s23 + $0x8] sm:$0xff]  }
 0xae1   : > { %v3894_v58 = vpop.f32.mrf.mxu0  ;;  %3930 = vmatpush3.bf16.msra.mxu0 %v4100_v49  ;;  %v4106_v54 = vld [vmem:[%s4328_s23] sm:$0xff]  }
 0xae2   : > { %3931 = vmatprep.subr.bf16.mxu0 %v4217_v3  ;;  %v4107_v58 = vld [vmem:[%s4333_s26 + $0x38] sm:$0xff]  }
 0xae6   : > { %v2786_v42 = vpop.f32.mrf.mxu0 }
 0xae8   : > { %v3905_v43 = vpop.f32.mrf.mxu0 }
 0xae9   : > { %v4109_v43 = vld [vmem:[%s4333_s26 + $0x28] sm:$0xff]  }
 0xaea   : > { %v2789_v55 = vpop.f32.mrf.mxu0 }
 0xaeb   : > { %v4110_v55 = vld [vmem:[%s4333_s26 + $0x20] sm:$0xff]  }
 0xaec   : > { %v3906_v56 = vpop.f32.mrf.mxu0 }
 0xaed   : > { %v4111_v56 = vld [vmem:[%s4333_s26 + $0x18] sm:$0xff]  }
 0xb09   : > { %v2884_v29 = vpop.f32.mrf.mxu0 }
 0xb0b   : > { %v3917_v31 = vpop.f32.mrf.mxu0 }
 0xb0d   : > { %v2887_v60 = vpop.f32.mrf.mxu0 }
 0xb0f   : > { %v2737_v61 = vpop.f32.mrf.mxu1  ;;  %v3918_v62 = vpop.f32.mrf.mxu0 }
 0xb10   : > { %v4061_v0 = vpack.i.bf16 %v2786_v42, %v2737_v61  ;;  %v4108_v42 = vld [vmem:[%s4333_s26 + $0x30] sm:$0xff]  }
 0xb11   : > { %v3899_v1 = vpop.f32.mrf.mxu1 }
 0xb12   : > { %4062 = vrot.lane.b32.xlu0 %v4061_v0, %s4225_s2 }
 0xb13   : > { %v2740_v5 = vpop.f32.mrf.mxu1 }
 0xb15   : > { %v3900_v16 = vpop.f32.mrf.mxu1 }
 0xb17   : > { %v2835_v7 = vpop.f32.mrf.mxu1 }
 0xb18   : > { %v4066_v8 = vpack.i.bf16 %v2884_v29, %v2835_v7 }
 0xb19   : > { %v3911_v10 = vpop.f32.mrf.mxu1 }
 0xb1a   : > { %4067 = vrot.lane.b32.xlu1 %v4066_v8, %s4226_s21 }
 0xb1b   : > { %v2838_v13 = vpop.f32.mrf.mxu1 }
 0xb1d   : > { %v3912_v59 = vpop.f32.mrf.mxu1 }
 0xb50   : > { %v4058_v14 = vpop.permute.xlu1 %4057 }
 0xb51   : > { %v4060_v35 = vunpack.i.h.bf16 %v4058_v14  ;;  %v4059_v19 = vunpack.i.l.bf16 %v4058_v14  ;;  %v3012_v14 = vrot.slane %v4660_v27, %v1691_v9  ;;  %v4113_v9 = vld [vmem:[%s4333_s26 + $0x8] sm:$0xff]  }
 0xb53   : > { %v2915_v22 = vsel %vm785_vm1, %v2590_v38, %v4060_v35  ;;  %v2914_v23 = vsel %vm785_vm1, %v2541_v34, %v4059_v19 }
 0xb84   : > { %v4063_v12 = vpop.permute.xlu0 %4062 }
 0xb85   : > { %v4065_v18 = vunpack.i.h.bf16 %v4063_v12  ;;  %v4064_v20 = vunpack.i.l.bf16 %v4063_v12 }
 0xb87   : > { %v2917_v26 = vsel %vm1682_vm3, %v2915_v22, %v4065_v18  ;;  %v2916_v36 = vsel %vm1682_vm3, %v2914_v23, %v4064_v20  ;;  %v3018_v18 = vrot.slane %v4660_v27, %v1793_v11 }
 0xb8c   : > { %v4068_v21 = vpop.permute.xlu1 %4067 }
 0xb8d   : > { %v4070_v24 = vunpack.i.h.bf16 %v4068_v21  ;;  %v4069_v25 = vunpack.i.l.bf16 %v4068_v21 }
 0xb8f   : > { %v2919_v53 = vsel %vm1685_vm4, %v2917_v26, %v4070_v24  ;;  %v2918_v32 = vsel %vm1685_vm4, %v2916_v36, %v4069_v25  ;;  %v4112_v26 = vld [vmem:[%s4333_s26 + $0x10] sm:$0xff]   ;;  %v4114_v36 = vld [vmem:[%s4333_s26] sm:$0xff]  }
 0xb90   : > { %v2920_v37 = vpack.c.bf16 %v2919_v53, %v2918_v32  ;;  %v3024_v53 = vsub.s32 5, %v4388_v15 }
 0xb92   : > { %3924 = vmatmul.mubr.msk.bf16.vlgmr.msra.gmra.mxu1 %vm1705_vm5, %v2920_v37  ;;  %v3025_v27 = vrot.slane %v4866_v30, %v3024_v53 }
 0xb93   : > { %3963 = vmatprep.mubr.msk.bf16.mxu1 %vm4218_vm0, %v4217_v3  ;;  %3948 = vmatpush3.bf16.msra.mxu1 %v4107_v58 }
 0xb94   : > { %3949 = vmatprep.subr.bf16.mxu1 %v4217_v3 }
 0xb97   : > { %3950 = vmatpush3.bf16.msra.mxu1 %v4108_v42 }
 0xb98   : > { %3951 = vmatprep.subr.bf16.mxu1 %v4217_v3 }
 0xb9b   : > { %3952 = vmatpush3.bf16.msra.mxu1 %v4109_v43 }
 0xb9c   : > { %3953 = vmatprep.subr.bf16.mxu1 %v4217_v3 }
 0xb9f   : > { %3954 = vmatpush3.bf16.msra.mxu1 %v4110_v55 }
 0xba0   : > { %3955 = vmatprep.subr.bf16.mxu1 %v4217_v3 }
 0xba3   : > { %3956 = vmatpush3.bf16.msra.mxu1 %v4111_v56 }
 0xba4   : > { %3957 = vmatprep.subr.bf16.mxu1 %v4217_v3 }
 0xba7   : > { %3958 = vmatpush3.bf16.msra.mxu1 %v4112_v26 }
 0xba8   : > { %3959 = vmatprep.subr.bf16.mxu1 %v4217_v3 }
 0xbab   : > { %3960 = vmatpush3.bf16.msra.mxu1 %v4113_v9 }
 0xbac   : > { %3961 = vmatprep.subr.bf16.mxu1 %v4217_v3 }
 0xbaf   : > { %3962 = vmatpush3.bf16.msra.mxu1 %v4114_v36 }
 0xc52   : > { %v2974_v34 = vpop.f32.mrf.mxu1 }
 0xc53   : > { %v2975_v38 = vadd.f32 %v2974_v34, %v2924_v33 }
 0xc54   : > { %v3925_v39 = vpop.f32.mrf.mxu1 }
 0xc55   : > { %v4872_v17 = vadd.f32 %v2975_v38, %v4666_v2 }
 0xc56   : > { %v2977_v40 = vpop.f32.mrf.mxu1 }
 0xc57   : > { %v2978_v44 = vadd.f32 %v2977_v40, %v2924_v33  ;;  %2983 = vadd.xlane.f32.xlu0 %v4872_v17  ;;  %v2989_v47 = vmul.f32 %v4872_v17, %v4872_v17 }
 0xc58   : > { %v3926_v45 = vpop.f32.mrf.mxu1 }
 0xc59   : > { %v4876_v46 = vadd.f32 %v2978_v44, %v4668_v4  ;;  %v4101_v4 = vld [vmem:[%s4328_s23 + $0x28] sm:$0xff]   ;;  %v3211_v44 = vsub.s32 6, %v4388_v15 }
 0xc5a   : > { %3932 = vmatpush3.bf16.msra.mxu0 %v4101_v4 }
 0xc5b   : > { %2991 = vadd.xlane.f32.xlu0 %v2989_v47  ;;  %2985 = vadd.xlane.f32.xlu1 %v4876_v46  ;;  %v2990_v2 = vmul.f32 %v4876_v46, %v4876_v46 }
 0xc5c   : > { %3933 = vmatprep.subr.bf16.mxu0 %v4217_v3 }
 0xc5e   : > { %3934 = vmatpush3.bf16.msra.mxu0 %v4102_v52 }
 0xc5f   : > { %2993 = vadd.xlane.f32.xlu0 %v2990_v2  ;;  %3935 = vmatprep.subr.bf16.mxu0 %v4217_v3 }
 0xc62   : > { %3936 = vmatpush3.bf16.msra.mxu0 %v4103_v50 }
 0xc63   : > { %3937 = vmatprep.subr.bf16.mxu0 %v4217_v3 }
 0xc66   : > { %3938 = vmatpush3.bf16.msra.mxu0 %v4104_v41 }
 0xc67   : > { %3939 = vmatprep.subr.bf16.mxu0 %v4217_v3 }
 0xc6a   : > { %3940 = vmatpush3.bf16.msra.mxu0 %v4105_v51 }
 0xc6b   : > { %3941 = vmatprep.subr.bf16.mxu0 %v4217_v3  ;;  %v3212_v3 = vrot.slane %v4866_v30, %v3211_v44 }
 0xc6e   : > { %3942 = vmatpush3.bf16.msra.mxu0 %v4106_v54 }
 0xce0   : > { %v2984_v57 = vpop.xlane.xlu0 %2983 }
 0xce1   : > { %v2987_v29 = vmul.f32 0.03125, %v2984_v57 }
 0xce3   : > { %v2997_v61 = vmul.f32 %v2987_v29, %v2987_v29  ;;  %v3001_v13 = vsub.f32 %v4872_v17, %v2987_v29 }
 0xce4   : > { %v2992_v31 = vpop.xlane.xlu0 %2991  ;;  %v2986_v60 = vpop.xlane.xlu1 %2985 }
 0xce5   : > { %v2995_v62 = vmul.f32 0.03125, %v2992_v31  ;;  %v2988_v63 = vmul.f32 0.03125, %v2986_v60 }
 0xce7   : > { %v2999_v0 = vsub.f32 %v2995_v62, %v2997_v61  ;;  %v2998_v16 = vmul.f32 %v2988_v63, %v2988_v63  ;;  %v3002_v35 = vsub.f32 %v4876_v46, %v2988_v63  ;;  %v4192_v63 = vld [vmem:[%s4338_s29 + $0x8] sm:$0x1f] }
 0xce8   : > { %v2994_v1 = vpop.xlane.xlu0 %2993 }
 0xce9   : > { %v3003_v5 = vadd.f32 1e-05, %v2999_v0  ;;  %v2996_v7 = vmul.f32 0.03125, %v2994_v1  ;;  %v3244_v0 = vrot.slane %v4192_v63, %v1887_v6 }
 0xceb   : > { %4183 = vrsqrt.f32 %v3003_v5  ;;  %v3000_v8 = vsub.f32 %v2996_v7, %v2998_v16  ;;  %v3250_v16 = vrot.slane %v4192_v63, %v2923_v28 }
 0xced   : > { %v3004_v10 = vadd.f32 1e-05, %v3000_v8 }
 0xcef   : > { %4185 = vrsqrt.f32 %v3004_v10 }
 0xcf8   : > { %v4184_v59 = vpop.eup %4183 }
 0xcf9   : > { %v3007_v12 = vmul.f32 %v4184_v59, %v3001_v13 }
 0xcfb   : > { %v3013_v21 = vmul.f32 %v3012_v14, %v3007_v12 }
 0xcfc   : > { %v4186_v19 = vpop.eup %4185 }
 0xcfd   : > { %v3008_v20 = vmul.f32 %v4186_v19, %v3002_v35  ;;  %v3019_v23 = vadd.f32 %v3018_v18, %v3013_v21 }
 0xcff   : > { %v3014_v22 = vmul.f32 %v3012_v14, %v3008_v20 }
 0xd01   : > { %v3020_v24 = vadd.f32 %v3018_v18, %v3014_v22 }
 0xd03   : > { %v3021_v25 = vpack.c.bf16 %v3020_v24, %v3019_v23 }
 0xd05   : > { %3944 = vmatmul.mubr.bf16.vlgmr.msra.gmra.mxu0 %v3021_v25 }
 0xdc5   : > { %v3108_v11 = vpop.f32.mrf.mxu0 }
 0xdc6   : > { %v3109_v37 = vadd.f32 %v3108_v11, %v3025_v27 }
 0xdc7   : > { %v3945_v32 = vpop.f32.mrf.mxu0 }
 0xdc8   : > { %v3115_v39 = vmax.f32 %v3109_v37, 0.0 }
 0xdc9   : > { %v3111_v33 = vpop.f32.mrf.mxu0 }
 0xdca   : > { %v3112_v34 = vadd.f32 %v3111_v33, %v3025_v27 }
 0xdcb   : > { %v3946_v38 = vpop.f32.mrf.mxu0 }
 0xdcc   : > { %v3116_v17 = vmax.f32 %v3112_v34, 0.0 }
 0xdce   : > { %v3117_v40 = vpack.c.bf16 %v3116_v17, %v3115_v39 }
 0xdd0   : > { %3964 = vmatmul.mubr.bf16.vlgmr.msra.gmra.mxu1 %v3117_v40 }
 0xe90   : > { %v3200_v45 = vpop.f32.mrf.mxu1 }
 0xe91   : > { %v3207_v46 = vadd.f32 %v3200_v45, %v3019_v23 }
 0xe92   : > { %v3965_v47 = vpop.f32.mrf.mxu1 }
 0xe93   : > { %v3213_v2 = vadd.f32 %v3212_v3, %v3207_v46 }
 0xe94   : > { %v3203_v48 = vpop.f32.mrf.mxu1 }
 0xe95   : > { %v3208_v49 = vadd.f32 %v3203_v48, %v3020_v24  ;;  %3215 = vadd.xlane.f32.xlu1 %v3213_v2  ;;  %v3221_v50 = vmul.f32 %v3213_v2, %v3213_v2 }
 0xe96   : > { %v3966_v4 = vpop.f32.mrf.mxu1 }
 0xe97   : > { %v3214_v52 = vadd.f32 %v3212_v3, %v3208_v49 }
 0xe99   : > { %3223 = vadd.xlane.f32.xlu1 %v3221_v50  ;;  %3217 = vadd.xlane.f32.xlu0 %v3214_v52  ;;  %v3222_v41 = vmul.f32 %v3214_v52, %v3214_v52 }
 0xe9d   : > { %3225 = vadd.xlane.f32.xlu0 %v3222_v41 }
 0xf1e   : > { %v3216_v51 = vpop.xlane.xlu1 %3215 }
 0xf1f   : > { %v3219_v54 = vmul.f32 0.03125, %v3216_v51 }
 0xf21   : > { %v3229_v30 = vmul.f32 %v3219_v54, %v3219_v54  ;;  %v3233_v1 = vsub.f32 %v3213_v2, %v3219_v54 }
 0xf22   : > { %v3224_v58 = vpop.xlane.xlu1 %3223  ;;  %v3218_v42 = vpop.xlane.xlu0 %3217 }
 0xf23   : > { %v3227_v43 = vmul.f32 0.03125, %v3224_v58  ;;  %v3220_v55 = vmul.f32 0.03125, %v3218_v42 }
 0xf25   : > { %v3231_v56 = vsub.f32 %v3227_v43, %v3229_v30  ;;  %v3230_v31 = vmul.f32 %v3220_v55, %v3220_v55  ;;  %v3234_v10 = vsub.f32 %v3214_v52, %v3220_v55 }
 0xf26   : > { %v3226_v57 = vpop.xlane.xlu0 %3225 }
 0xf27   : > { %v3235_v29 = vadd.f32 1e-05, %v3231_v56  ;;  %v3228_v60 = vmul.f32 0.03125, %v3226_v57 }
 0xf29   : > { %4187 = vrsqrt.f32 %v3235_v29  ;;  %v3232_v61 = vsub.f32 %v3228_v60, %v3230_v31 }
 0xf2b   : > { %v3236_v62 = vadd.f32 1e-05, %v3232_v61 }
 0xf2d   : > { %4189 = vrsqrt.f32 %v3236_v62 }
 0xf36   : > { %v4188_v5 = vpop.eup %4187 }
 0xf37   : > { %v3239_v7 = vmul.f32 %v4188_v5, %v3233_v1 }
 0xf39   : > { %v3245_v8 = vmul.f32 %v3244_v0, %v3239_v7 }
 0xf3a   : > { %v4190_v13 = vpop.eup %4189 }
 0xf3b   : > { %v3251_v59 = vadd.f32 %v3250_v16, %v3245_v8  ;;  %v3240_v14 = vmul.f32 %v4190_v13, %v3234_v10 }
 0xf3d   : > { %3253 = vst [vmem:[%s4955_s10] sm:$0xff] %v3251_v59  ;;  %v3246_v12 = vmul.f32 %v3244_v0, %v3240_v14 }
 0xf3f   : > { %v3252_v35 = vadd.f32 %v3250_v16, %v3246_v12 }
 0xf41   : > { %3254 = vst [vmem:[%s4955_s10 + $0x8] sm:$0xff] %v3252_v35 }
 0xf42 PF: > { %s20_s15 = sadd.s32 1, %s4215_s15   ;;  %s4964_s13 = smov %s4211_s14 }
 0xf43   : > { %p17_p6 = scmp.ge.s32.totalorder %s20_s15, 5   ;;  %s4965_s14 = smov %s4967_s16 }
 0xf45   :  { %19 = sbr.rel (!%p17_p6) target bundleno = 5 (0x5), region = 121 }

</bundles_post_ra>
